<compile_context>
chip_gen: v6e
topology: v6e:2x2x1
jax: 0.10.0
libtpu: 0.0.40
codegen_flags: <defaults>
</compile_context>

<pallas_src>
import functools

import jax
import jax.numpy as jnp
import numpy as np
from jax.experimental import pallas as pl
from jax.experimental.pallas import tpu as pltpu

BN_EPS = 1e-5

_VMEM = pl.BlockSpec(memory_space=pltpu.MemorySpace.VMEM)
_ANY = pl.BlockSpec(memory_space=pl.ANY)

# Default MXU precision (single pass), f32 accumulation.
_DOT = functools.partial(jnp.dot, preferred_element_type=jnp.float32)


def _round_up(n, m):
  return ((n + m - 1) // m) * m


# ----------------------------------------------------------------------------
# Fused Pallas kernel: whole MultiZUnshared forward in one call.
# ----------------------------------------------------------------------------
def _multiz_fused_kernel(
    x_hr_ref,    # (B, D_high)
    x_lr_ref,    # (B, D_low)
    eps_hr_ref,  # (B, K)
    eps_lr_ref,  # (B, K)
    ew1h_ref,    # (D_high, 2*D_block)  HR layer-1 weight in cols [0:D_block)
    ew1l_ref,    # (D_low,  2*D_block)  LR layer-1 weight in cols [D_block:)
    ew23_ref,    # (2, 2*D_block, 2*D_block) block-diag encoder layer-2/3 weights
    ewh_ref,     # (2*D_block, 4*SEC)   lane-aligned mu/lv heads (both branches)
    evec_ref,    # (9, 2*D_block)       [b1,g1,be1,b2,g2,be2,b3,g3,be3]
    ebh_ref,     # (1, 4*SEC)
    dw1_ref,     # (2, K, 2*D_dec)      per-branch decoder layer-1 weights
    dvec_ref,    # (9, 2*D_dec)
    dbh_ref,     # (1, N_dec)
    dw23_hbm,    # (2, 2*D_dec, 2*D_dec)   [pl.ANY -> manual DMA]
    dwh_hbm,     # (2*D_dec, N_dec)        [pl.ANY -> manual DMA]
    enc_out_ref,  # (B, 4*SEC)   lane-aligned [mu_hr | mu_lr | lv_hr | lv_lr]
    dec_out_ref,  # (B, N_dec)   lane-aligned [th_mu | th_lv | tl_mu | tl_lv]
    dw23_vmem,   # scratch
    dwh_vmem,    # scratch
    dma_sem,     # scratch DMA semaphores (2,)
):
  # Kick off decoder-weight DMAs; they complete under the encoder compute.
  cp23 = pltpu.make_async_copy(dw23_hbm, dw23_vmem, dma_sem.at[0])
  cpwh = pltpu.make_async_copy(dwh_hbm, dwh_vmem, dma_sem.at[1])
  cp23.start()
  cpwh.start()

  def relu_bn(y, g, be):
    y = jnp.maximum(y, 0.0)
    mean = jnp.mean(y, axis=0, keepdims=True)
    var = jnp.mean(jnp.square(y - mean), axis=0, keepdims=True)  # two-pass, biased
    return (y - mean) * jax.lax.rsqrt(var + BN_EPS) * g + be

  # ---- fused (HR || LR) encoder -------------------------------------------
  evec = evec_ref[...]
  h = relu_bn(
      _DOT(x_hr_ref[...], ew1h_ref[...]) + _DOT(x_lr_ref[...], ew1l_ref[...])
      + evec[0:1],
      evec[1:2], evec[2:3])
  h = relu_bn(_DOT(h, ew23_ref[0]) + evec[3:4], evec[4:5], evec[5:6])
  h = relu_bn(_DOT(h, ew23_ref[1]) + evec[6:7], evec[7:8], evec[8:9])
  enc = _DOT(h, ewh_ref[...]) + ebh_ref[...]          # (B, 4*SEC), lane-aligned
  enc_out_ref[...] = enc                              # unmasked store

  # ---- reparameterize: z = mu + eps * exp(0.5 * logvar) --------------------
  k = eps_hr_ref.shape[-1]
  sec = enc.shape[-1] // 4                            # 128-multiple section width
  z_hr = enc[:, 0:k] + eps_hr_ref[...] * jnp.exp(0.5 * enc[:, 2 * sec:2 * sec + k])
  z_lr = enc[:, sec:sec + k] + eps_lr_ref[...] * jnp.exp(
      0.5 * enc[:, 3 * sec:3 * sec + k])

  # ---- fused (HR || LR) decoder -------------------------------------------
  dvec = dvec_ref[...]
  h = relu_bn(
      _DOT(z_hr, dw1_ref[0]) + _DOT(z_lr, dw1_ref[1]) + dvec[0:1],
      dvec[1:2], dvec[2:3])
  cp23.wait()
  h = relu_bn(_DOT(h, dw23_vmem[0]) + dvec[3:4], dvec[4:5], dvec[5:6])
  h = relu_bn(_DOT(h, dw23_vmem[1]) + dvec[6:7], dvec[7:8], dvec[8:9])
  cpwh.wait()
  dec_out_ref[...] = _DOT(h, dwh_vmem[...]) + dbh_ref[...]   # unmasked store


# ----------------------------------------------------------------------------
# Parameter construction (PyTorch-style Linear init) + packing
# ----------------------------------------------------------------------------
def _linear_init(key, d_in, d_out):
  kw, kb = jax.random.split(key)
  bound = 1.0 / np.sqrt(d_in)
  w = jax.random.uniform(kw, (d_in, d_out), jnp.float32, -bound, bound)
  b = jax.random.uniform(kb, (1, d_out), jnp.float32, -bound, bound)
  return w, b


def make_block_params(key, d_in, d_out, d_hidden):
  """Block(D_in, D_out, D=d_hidden): 3x (Linear, ReLU, BN) + mu/logvar heads."""
  keys = jax.random.split(key, 5)
  w1, b1 = _linear_init(keys[0], d_in, d_hidden)
  w2, b2 = _linear_init(keys[1], d_hidden, d_hidden)
  w3, b3 = _linear_init(keys[2], d_hidden, d_hidden)
  wmu, bmu = _linear_init(keys[3], d_hidden, d_out)
  wlv, blv = _linear_init(keys[4], d_hidden, d_out)
  ones = jnp.ones((1, d_hidden), jnp.float32)
  zeros = jnp.zeros((1, d_hidden), jnp.float32)
  return dict(
      w1=w1, b1=b1, g1=ones, be1=zeros,
      w2=w2, b2=b2, g2=ones, be2=zeros,
      w3=w3, b3=b3, g3=ones, be3=zeros,
      wmu=wmu, bmu=bmu, wlv=wlv, blv=blv,
  )


def make_multiz_raw_params(key, d_low=50, d_high=200, k=20, d_block=30, d_dec=20):
  k1, k2, k3, k4 = jax.random.split(key, 4)
  return dict(
      hr_encode=make_block_params(k1, d_high, k, d_block),
      lr_encode=make_block_params(k2, d_low, k, d_block),
      hr_decode=make_block_params(k3, k, d_high, d_dec),  # Block default D=20
      lr_decode=make_block_params(k4, k, d_low, d_dec),
  )


def _blockdiag(a, b):
  m, n = a.shape
  p, q = b.shape
  out = jnp.zeros((m + p, n + q), jnp.float32)
  return out.at[:m, :n].set(a).at[m:, n:].set(b)


def _vec_slab(p_hr, p_lr):
  rows = [jnp.concatenate([p_hr[n], p_lr[n]], axis=-1)
          for n in ("b1", "g1", "be1", "b2", "g2", "be2", "b3", "g3", "be3")]
  return jnp.concatenate(rows, axis=0)  # (9, D_hr + D_lr)


def pack_multiz_params(raw, *, d_low, d_high, k, d_block, d_dec=20):
  """One-time host-side packing into fused / lane-aligned slabs."""
  hr_e, lr_e = raw["hr_encode"], raw["lr_encode"]
  hr_d, lr_d = raw["hr_decode"], raw["lr_decode"]
  dh = 2 * d_block   # fused encoder hidden width (never split -> not lane-padded)
  dd = 2 * d_dec     # fused decoder hidden width

  # Encoder layer 1: per-branch weights column-padded into the fused hidden.
  ew1h = jnp.zeros((d_high, dh), jnp.float32).at[:, :d_block].set(hr_e["w1"])
  ew1l = jnp.zeros((d_low, dh), jnp.float32).at[:, d_block:].set(lr_e["w1"])
  ew23 = jnp.stack([_blockdiag(hr_e["w2"], lr_e["w2"]),
                    _blockdiag(hr_e["w3"], lr_e["w3"])])
  evec = _vec_slab(hr_e, lr_e)

  # Encoder heads: 4 sections [mu_hr | mu_lr | lv_hr | lv_lr], each 128-aligned.
  sec = _round_up(k, 128)
  ewh = jnp.zeros((dh, 4 * sec), jnp.float32)
  ewh = ewh.at[:d_block, 0:k].set(hr_e["wmu"])
  ewh = ewh.at[d_block:, sec:sec + k].set(lr_e["wmu"])
  ewh = ewh.at[:d_block, 2 * sec:2 * sec + k].set(hr_e["wlv"])
  ewh = ewh.at[d_block:, 3 * sec:3 * sec + k].set(lr_e["wlv"])
  ebh = jnp.zeros((1, 4 * sec), jnp.float32)
  ebh = ebh.at[:, 0:k].set(hr_e["bmu"])
  ebh = ebh.at[:, sec:sec + k].set(lr_e["bmu"])
  ebh = ebh.at[:, 2 * sec:2 * sec + k].set(hr_e["blv"])
  ebh = ebh.at[:, 3 * sec:3 * sec + k].set(lr_e["blv"])

  # Decoder layer 1 (per branch) + block-diag layers 2/3.
  dw1 = jnp.stack([
      jnp.zeros((k, dd), jnp.float32).at[:, :d_dec].set(hr_d["w1"]),
      jnp.zeros((k, dd), jnp.float32).at[:, d_dec:].set(lr_d["w1"]),
  ])
  dw23 = jnp.stack([_blockdiag(hr_d["w2"], lr_d["w2"]),
                    _blockdiag(hr_d["w3"], lr_d["w3"])])
  dvec = _vec_slab(hr_d, lr_d)

  # Decoder heads: 4 sections [th_mu | th_lv | tl_mu | tl_lv], 128-aligned starts.
  sh = _round_up(d_high, 128)
  sl = _round_up(d_low, 128)
  n_dec = 2 * sh + 2 * sl
  dwh = jnp.zeros((dd, n_dec), jnp.float32)
  dwh = dwh.at[:d_dec, 0:d_high].set(hr_d["wmu"])
  dwh = dwh.at[:d_dec, sh:sh + d_high].set(hr_d["wlv"])
  dwh = dwh.at[d_dec:, 2 * sh:2 * sh + d_low].set(lr_d["wmu"])
  dwh = dwh.at[d_dec:, 2 * sh + sl:2 * sh + sl + d_low].set(lr_d["wlv"])
  dbh = jnp.zeros((1, n_dec), jnp.float32)
  dbh = dbh.at[:, 0:d_high].set(hr_d["bmu"])
  dbh = dbh.at[:, sh:sh + d_high].set(hr_d["blv"])
  dbh = dbh.at[:, 2 * sh:2 * sh + d_low].set(lr_d["bmu"])
  dbh = dbh.at[:, 2 * sh + sl:2 * sh + sl + d_low].set(lr_d["blv"])

  return dict(ew1h=ew1h, ew1l=ew1l, ew23=ew23, ewh=ewh, evec=evec, ebh=ebh,
              dw1=dw1, dw23=dw23, dwh=dwh, dvec=dvec, dbh=dbh)


# ----------------------------------------------------------------------------
# Forward (single fused pallas_call)
# ----------------------------------------------------------------------------
@jax.jit
def multiz_forward(packed, x_hr, x_lr, eps_high, eps_low):
  b, d_high = x_hr.shape
  d_low = x_lr.shape[1]
  k = eps_high.shape[1]
  n_enc = packed["ewh"].shape[-1]
  n_dec = packed["dwh"].shape[-1]

  w_names = ("ew1h", "ew1l", "ew23", "ewh", "evec", "ebh",
             "dw1", "dw23", "dwh", "dvec", "dbh")
  mm_names = ("ew1h", "ew1l", "ew23", "ewh", "dw1", "dw23", "dwh")
  w_elems = sum(int(np.prod(packed[n].shape)) for n in w_names)
  flops = 2 * b * sum(int(np.prod(packed[n].shape)) for n in mm_names)
  bytes_accessed = 4 * (x_hr.size + x_lr.size + eps_high.size + eps_low.size
                        + w_elems + b * (n_enc + n_dec))
  cost = pl.CostEstimate(flops=flops, transcendentals=2 * b * k + 400,
                         bytes_accessed=bytes_accessed)

  enc_out, dec_out = pl.pallas_call(
      _multiz_fused_kernel,
      out_shape=(
          jax.ShapeDtypeStruct((b, n_enc), jnp.float32),
          jax.ShapeDtypeStruct((b, n_dec), jnp.float32),
      ),
      in_specs=[_VMEM] * 13 + [_ANY, _ANY],
      out_specs=(_VMEM, _VMEM),
      scratch_shapes=[
          pltpu.VMEM(packed["dw23"].shape, jnp.float32),
          pltpu.VMEM(packed["dwh"].shape, jnp.float32),
          pltpu.SemaphoreType.DMA((2,)),
      ],
      cost_estimate=cost,
  )(
      x_hr, x_lr, eps_high, eps_low,
      packed["ew1h"], packed["ew1l"], packed["ew23"], packed["ewh"],
      packed["evec"], packed["ebh"],
      packed["dw1"], packed["dvec"], packed["dbh"],
      packed["dw23"], packed["dwh"],
  )

  # Split the lane-aligned slabs back into the module's return structure.
  sec = n_enc // 4
  sh = _round_up(d_high, 128)
  sl = _round_up(d_low, 128)
  mu_hr = enc_out[:, 0:k]
  mu_lr = enc_out[:, sec:sec + k]
  lv_hr = enc_out[:, 2 * sec:2 * sec + k]
  lv_lr = enc_out[:, 3 * sec:3 * sec + k]
  th_mu = dec_out[:, 0:d_high]
  th_lv = dec_out[:, sh:sh + d_high]
  tl_mu = dec_out[:, 2 * sh:2 * sh + d_low]
  tl_lv = dec_out[:, 2 * sh + sl:2 * sh + sl + d_low]

  theta_high_z = (th_mu, th_lv)
  phi_high_x = (mu_hr, lv_hr)
  theta_low_z = (tl_mu, tl_lv)
  phi_low_x = (mu_lr, lv_lr)
  return theta_high_z, phi_high_x, theta_low_z, phi_low_x


# ----------------------------------------------------------------------------
# Pure-JAX reference (unfused, per-branch) for a correctness gate.
# ----------------------------------------------------------------------------
def _ref_block(p, x):
  def layer(h, w, b, g, be):
    y = _DOT(h, w) + b
    y = jnp.maximum(y, 0.0)
    mean = jnp.mean(y, axis=0, keepdims=True)
    var = jnp.mean((y - mean) ** 2, axis=0, keepdims=True)
    return (y - mean) * jax.lax.rsqrt(var + BN_EPS) * g + be

  h = layer(x, p["w1"], p["b1"], p["g1"], p["be1"])
  h = layer(h, p["w2"], p["b2"], p["g2"], p["be2"])
  h = layer(h, p["w3"], p["b3"], p["g3"], p["be3"])
  return _DOT(h, p["wmu"]) + p["bmu"], _DOT(h, p["wlv"]) + p["blv"]


def reference_forward(raw, x_hr, x_lr, eps_high, eps_low):
  phi_h = _ref_block(raw["hr_encode"], x_hr)
  phi_l = _ref_block(raw["lr_encode"], x_lr)
  z_h = phi_h[0] + eps_high * jnp.exp(0.5 * phi_h[1])
  z_l = phi_l[0] + eps_low * jnp.exp(0.5 * phi_l[1])
  th = _ref_block(raw["hr_decode"], z_h)
  tl = _ref_block(raw["lr_decode"], z_l)
  return th, phi_h, tl, phi_l


if __name__ == "__main__":
  B = 8
  D_LOW, D_HIGH, K, D_BLOCK, D_DEC = 50, 200, 20, 30, 20

  root = jax.random.PRNGKey(0)
  k_params, k_xhr, k_xlr, k_eh, k_el = jax.random.split(root, 5)

  raw_params = make_multiz_raw_params(k_params, D_LOW, D_HIGH, K, D_BLOCK, D_DEC)
  packed_params = pack_multiz_params(
      raw_params, d_low=D_LOW, d_high=D_HIGH, k=K, d_block=D_BLOCK, d_dec=D_DEC)

  x_hr = jax.random.normal(k_xhr, (B, D_HIGH), jnp.float32)
  x_lr = jax.random.normal(k_xlr, (B, D_LOW), jnp.float32)
  # torch.randn_like(std) equivalent: sampled here deterministically and fed in.
  eps_high = jax.random.normal(k_eh, (B, K), jnp.float32)
  eps_low = jax.random.normal(k_el, (B, K), jnp.float32)

  out = multiz_forward(packed_params, x_hr, x_lr, eps_high, eps_low)
  jax.block_until_ready(out)

  theta_high_z, phi_high_x, theta_low_z, phi_low_x = out
  assert theta_high_z[0].shape == (B, D_HIGH) and theta_high_z[1].shape == (B, D_HIGH)
  assert phi_high_x[0].shape == (B, K) and phi_high_x[1].shape == (B, K)
  assert theta_low_z[0].shape == (B, D_LOW) and theta_low_z[1].shape == (B, D_LOW)
  assert phi_low_x[0].shape == (B, K) and phi_low_x[1].shape == (B, K)
  assert all(bool(jnp.isfinite(a).all()) for pair in out for a in pair)

  # Numerical check against the unfused pure-JAX reference.
  ref = reference_forward(raw_params, x_hr, x_lr, eps_high, eps_low)
  for got_pair, want_pair in zip(out, ref):
    for got, want in zip(got_pair, want_pair):
      np.testing.assert_allclose(np.asarray(got), np.asarray(want),
                                 rtol=2e-3, atol=2e-3)

  print("KERNEL_OK")
</pallas_src>

<mosaic_0001>
module attributes {stable_mosaic.version = 11 : i64} {
  func.func @_multiz_fused_kernel(%arg0: memref<8x200xf32, #tpu.memory_space<vmem>>, %arg1: memref<8x50xf32, #tpu.memory_space<vmem>>, %arg2: memref<8x20xf32, #tpu.memory_space<vmem>>, %arg3: memref<8x20xf32, #tpu.memory_space<vmem>>, %arg4: memref<200x60xf32, #tpu.memory_space<vmem>>, %arg5: memref<50x60xf32, #tpu.memory_space<vmem>>, %arg6: memref<2x60x60xf32, #tpu.memory_space<vmem>>, %arg7: memref<60x512xf32, #tpu.memory_space<vmem>>, %arg8: memref<9x60xf32, #tpu.memory_space<vmem>>, %arg9: memref<1x512xf32, #tpu.memory_space<vmem>>, %arg10: memref<2x20x40xf32, #tpu.memory_space<vmem>>, %arg11: memref<9x40xf32, #tpu.memory_space<vmem>>, %arg12: memref<1x768xf32, #tpu.memory_space<vmem>>, %arg13: memref<2x40x40xf32, #tpu.memory_space<any>>, %arg14: memref<40x768xf32, #tpu.memory_space<any>>, %arg15: memref<8x512xf32, #tpu.memory_space<vmem>>, %arg16: memref<8x768xf32, #tpu.memory_space<vmem>>, %arg17: memref<2x40x40xf32, #tpu.memory_space<vmem>>, %arg18: memref<40x768xf32, #tpu.memory_space<vmem>>, %arg19: memref<2x!tpu.dma_semaphore, #tpu.memory_space<semaphore_mem>>) attributes {dimension_semantics = [], scalar_prefetch = 0 : i64, scratch_operands = 3 : i64, tpu.core_type = #tpu.core_type<tc>} {
    %c0_i32 = arith.constant 0 : i32
    %0 = tpu.memref_slice %arg19[%c0_i32] : memref<2x!tpu.dma_semaphore, #tpu.memory_space<semaphore_mem>> -> memref<1x!tpu.dma_semaphore, #tpu.memory_space<semaphore_mem>>
    %1 = tpu.memref_squeeze %0 : memref<1x!tpu.dma_semaphore, #tpu.memory_space<semaphore_mem>> -> memref<!tpu.dma_semaphore, #tpu.memory_space<semaphore_mem>>
    tpu.enqueue_dma source(%arg13 : memref<2x40x40xf32, #tpu.memory_space<any>>) target(%arg17 : memref<2x40x40xf32, #tpu.memory_space<vmem>>) target_semaphore(%1 : memref<!tpu.dma_semaphore, #tpu.memory_space<semaphore_mem>>)
    %c1_i32 = arith.constant 1 : i32
    %2 = tpu.memref_slice %arg19[%c1_i32] : memref<2x!tpu.dma_semaphore, #tpu.memory_space<semaphore_mem>> -> memref<1x!tpu.dma_semaphore, #tpu.memory_space<semaphore_mem>>
    %3 = tpu.memref_squeeze %2 : memref<1x!tpu.dma_semaphore, #tpu.memory_space<semaphore_mem>> -> memref<!tpu.dma_semaphore, #tpu.memory_space<semaphore_mem>>
    tpu.enqueue_dma source(%arg14 : memref<40x768xf32, #tpu.memory_space<any>>) target(%arg18 : memref<40x768xf32, #tpu.memory_space<vmem>>) target_semaphore(%3 : memref<!tpu.dma_semaphore, #tpu.memory_space<semaphore_mem>>)
    %c0 = arith.constant 0 : index
    %c0_0 = arith.constant 0 : index
    %4 = vector.load %arg8[%c0, %c0_0] : memref<9x60xf32, #tpu.memory_space<vmem>>, vector<9x60xf32>
    %c0_1 = arith.constant 0 : index
    %c0_2 = arith.constant 0 : index
    %5 = vector.load %arg0[%c0_1, %c0_2] : memref<8x200xf32, #tpu.memory_space<vmem>>, vector<8x200xf32>
    %c0_3 = arith.constant 0 : index
    %c0_4 = arith.constant 0 : index
    %6 = vector.load %arg4[%c0_3, %c0_4] : memref<200x60xf32, #tpu.memory_space<vmem>>, vector<200x60xf32>
    %cst = arith.constant dense<0.000000e+00> : vector<8x60xf32>
    %7 = tpu.matmul %5, %6, %cst {dimension_numbers = #tpu.dot_dimension_numbers<[1], [0], [0], [1], [0, 0, 1, 1], [], []>} : vector<8x200xf32>, vector<200x60xf32>, vector<8x60xf32> -> vector<8x60xf32>
    %c0_5 = arith.constant 0 : index
    %c0_6 = arith.constant 0 : index
    %8 = vector.load %arg1[%c0_5, %c0_6] : memref<8x50xf32, #tpu.memory_space<vmem>>, vector<8x50xf32>
    %c0_7 = arith.constant 0 : index
    %c0_8 = arith.constant 0 : index
    %9 = vector.load %arg5[%c0_7, %c0_8] : memref<50x60xf32, #tpu.memory_space<vmem>>, vector<50x60xf32>
    %cst_9 = arith.constant dense<0.000000e+00> : vector<8x60xf32>
    %10 = tpu.matmul %8, %9, %cst_9 {dimension_numbers = #tpu.dot_dimension_numbers<[1], [0], [0], [1], [0, 0, 1, 1], [], []>} : vector<8x50xf32>, vector<50x60xf32>, vector<8x60xf32> -> vector<8x60xf32>
    %11 = arith.addf %7, %10 : vector<8x60xf32>
    %12 = vector.extract_strided_slice %4 {offsets = [0, 0], sizes = [1, 60], strides = [1, 1]} : vector<9x60xf32> to vector<1x60xf32>
    %13 = vector.broadcast %12 : vector<1x60xf32> to vector<8x60xf32>
    %14 = arith.addf %11, %13 : vector<8x60xf32>
    %15 = vector.extract_strided_slice %4 {offsets = [1, 0], sizes = [1, 60], strides = [1, 1]} : vector<9x60xf32> to vector<1x60xf32>
    %16 = vector.extract_strided_slice %4 {offsets = [2, 0], sizes = [1, 60], strides = [1, 1]} : vector<9x60xf32> to vector<1x60xf32>
    %cst_10 = arith.constant 0.000000e+00 : f32
    %17 = vector.broadcast %cst_10 : f32 to vector<8x60xf32>
    %18 = arith.maximumf %14, %17 : vector<8x60xf32>
    %cst_11 = arith.constant dense<0.000000e+00> : vector<60xf32>
    %19 = vector.multi_reduction <add>, %18, %cst_11 [0] : vector<8x60xf32> to vector<60xf32>
    %20 = vector.shape_cast %19 : vector<60xf32> to vector<1x60xf32>
    %cst_12 = arith.constant 8.000000e+00 : f32
    %21 = vector.broadcast %cst_12 : f32 to vector<1x60xf32>
    %22 = arith.divf %20, %21 : vector<1x60xf32>
    %23 = vector.broadcast %22 : vector<1x60xf32> to vector<8x60xf32>
    %24 = arith.subf %18, %23 : vector<8x60xf32>
    %25 = arith.mulf %24, %24 : vector<8x60xf32>
    %cst_13 = arith.constant dense<0.000000e+00> : vector<60xf32>
    %26 = vector.multi_reduction <add>, %25, %cst_13 [0] : vector<8x60xf32> to vector<60xf32>
    %27 = vector.shape_cast %26 : vector<60xf32> to vector<1x60xf32>
    %cst_14 = arith.constant 8.000000e+00 : f32
    %28 = vector.broadcast %cst_14 : f32 to vector<1x60xf32>
    %29 = arith.divf %27, %28 : vector<1x60xf32>
    %30 = vector.broadcast %22 : vector<1x60xf32> to vector<8x60xf32>
    %31 = arith.subf %18, %30 : vector<8x60xf32>
    %cst_15 = arith.constant 9.99999974E-6 : f32
    %32 = vector.broadcast %cst_15 : f32 to vector<1x60xf32>
    %33 = arith.addf %29, %32 : vector<1x60xf32>
    %34 = math.rsqrt %33 : vector<1x60xf32>
    %35 = vector.broadcast %34 : vector<1x60xf32> to vector<8x60xf32>
    %36 = arith.mulf %31, %35 : vector<8x60xf32>
    %37 = vector.broadcast %15 : vector<1x60xf32> to vector<8x60xf32>
    %38 = arith.mulf %36, %37 : vector<8x60xf32>
    %39 = vector.broadcast %16 : vector<1x60xf32> to vector<8x60xf32>
    %40 = arith.addf %38, %39 : vector<8x60xf32>
    %c0_16 = arith.constant 0 : index
    %c0_17 = arith.constant 0 : index
    %c0_18 = arith.constant 0 : index
    %41 = vector.load %arg6[%c0_16, %c0_17, %c0_18] : memref<2x60x60xf32, #tpu.memory_space<vmem>>, vector<1x60x60xf32>
    %42 = vector.shape_cast %41 : vector<1x60x60xf32> to vector<60x60xf32>
    %cst_19 = arith.constant dense<0.000000e+00> : vector<8x60xf32>
    %43 = tpu.matmul %40, %42, %cst_19 {dimension_numbers = #tpu.dot_dimension_numbers<[1], [0], [0], [1], [0, 0, 1, 1], [], []>} : vector<8x60xf32>, vector<60x60xf32>, vector<8x60xf32> -> vector<8x60xf32>
    %44 = vector.extract_strided_slice %4 {offsets = [3, 0], sizes = [1, 60], strides = [1, 1]} : vector<9x60xf32> to vector<1x60xf32>
    %45 = vector.broadcast %44 : vector<1x60xf32> to vector<8x60xf32>
    %46 = arith.addf %43, %45 : vector<8x60xf32>
    %47 = vector.extract_strided_slice %4 {offsets = [4, 0], sizes = [1, 60], strides = [1, 1]} : vector<9x60xf32> to vector<1x60xf32>
    %48 = vector.extract_strided_slice %4 {offsets = [5, 0], sizes = [1, 60], strides = [1, 1]} : vector<9x60xf32> to vector<1x60xf32>
    %cst_20 = arith.constant 0.000000e+00 : f32
    %49 = vector.broadcast %cst_20 : f32 to vector<8x60xf32>
    %50 = arith.maximumf %46, %49 : vector<8x60xf32>
    %cst_21 = arith.constant dense<0.000000e+00> : vector<60xf32>
    %51 = vector.multi_reduction <add>, %50, %cst_21 [0] : vector<8x60xf32> to vector<60xf32>
    %52 = vector.shape_cast %51 : vector<60xf32> to vector<1x60xf32>
    %cst_22 = arith.constant 8.000000e+00 : f32
    %53 = vector.broadcast %cst_22 : f32 to vector<1x60xf32>
    %54 = arith.divf %52, %53 : vector<1x60xf32>
    %55 = vector.broadcast %54 : vector<1x60xf32> to vector<8x60xf32>
    %56 = arith.subf %50, %55 : vector<8x60xf32>
    %57 = arith.mulf %56, %56 : vector<8x60xf32>
    %cst_23 = arith.constant dense<0.000000e+00> : vector<60xf32>
    %58 = vector.multi_reduction <add>, %57, %cst_23 [0] : vector<8x60xf32> to vector<60xf32>
    %59 = vector.shape_cast %58 : vector<60xf32> to vector<1x60xf32>
    %cst_24 = arith.constant 8.000000e+00 : f32
    %60 = vector.broadcast %cst_24 : f32 to vector<1x60xf32>
    %61 = arith.divf %59, %60 : vector<1x60xf32>
    %62 = vector.broadcast %54 : vector<1x60xf32> to vector<8x60xf32>
    %63 = arith.subf %50, %62 : vector<8x60xf32>
    %cst_25 = arith.constant 9.99999974E-6 : f32
    %64 = vector.broadcast %cst_25 : f32 to vector<1x60xf32>
    %65 = arith.addf %61, %64 : vector<1x60xf32>
    %66 = math.rsqrt %65 : vector<1x60xf32>
    %67 = vector.broadcast %66 : vector<1x60xf32> to vector<8x60xf32>
    %68 = arith.mulf %63, %67 : vector<8x60xf32>
    %69 = vector.broadcast %47 : vector<1x60xf32> to vector<8x60xf32>
    %70 = arith.mulf %68, %69 : vector<8x60xf32>
    %71 = vector.broadcast %48 : vector<1x60xf32> to vector<8x60xf32>
    %72 = arith.addf %70, %71 : vector<8x60xf32>
    %c1 = arith.constant 1 : index
    %c0_26 = arith.constant 0 : index
    %c0_27 = arith.constant 0 : index
    %73 = vector.load %arg6[%c1, %c0_26, %c0_27] : memref<2x60x60xf32, #tpu.memory_space<vmem>>, vector<1x60x60xf32>
    %74 = vector.shape_cast %73 : vector<1x60x60xf32> to vector<60x60xf32>
    %cst_28 = arith.constant dense<0.000000e+00> : vector<8x60xf32>
    %75 = tpu.matmul %72, %74, %cst_28 {dimension_numbers = #tpu.dot_dimension_numbers<[1], [0], [0], [1], [0, 0, 1, 1], [], []>} : vector<8x60xf32>, vector<60x60xf32>, vector<8x60xf32> -> vector<8x60xf32>
    %76 = vector.extract_strided_slice %4 {offsets = [6, 0], sizes = [1, 60], strides = [1, 1]} : vector<9x60xf32> to vector<1x60xf32>
    %77 = vector.broadcast %76 : vector<1x60xf32> to vector<8x60xf32>
    %78 = arith.addf %75, %77 : vector<8x60xf32>
    %79 = vector.extract_strided_slice %4 {offsets = [7, 0], sizes = [1, 60], strides = [1, 1]} : vector<9x60xf32> to vector<1x60xf32>
    %80 = vector.extract_strided_slice %4 {offsets = [8, 0], sizes = [1, 60], strides = [1, 1]} : vector<9x60xf32> to vector<1x60xf32>
    %cst_29 = arith.constant 0.000000e+00 : f32
    %81 = vector.broadcast %cst_29 : f32 to vector<8x60xf32>
    %82 = arith.maximumf %78, %81 : vector<8x60xf32>
    %cst_30 = arith.constant dense<0.000000e+00> : vector<60xf32>
    %83 = vector.multi_reduction <add>, %82, %cst_30 [0] : vector<8x60xf32> to vector<60xf32>
    %84 = vector.shape_cast %83 : vector<60xf32> to vector<1x60xf32>
    %cst_31 = arith.constant 8.000000e+00 : f32
    %85 = vector.broadcast %cst_31 : f32 to vector<1x60xf32>
    %86 = arith.divf %84, %85 : vector<1x60xf32>
    %87 = vector.broadcast %86 : vector<1x60xf32> to vector<8x60xf32>
    %88 = arith.subf %82, %87 : vector<8x60xf32>
    %89 = arith.mulf %88, %88 : vector<8x60xf32>
    %cst_32 = arith.constant dense<0.000000e+00> : vector<60xf32>
    %90 = vector.multi_reduction <add>, %89, %cst_32 [0] : vector<8x60xf32> to vector<60xf32>
    %91 = vector.shape_cast %90 : vector<60xf32> to vector<1x60xf32>
    %cst_33 = arith.constant 8.000000e+00 : f32
    %92 = vector.broadcast %cst_33 : f32 to vector<1x60xf32>
    %93 = arith.divf %91, %92 : vector<1x60xf32>
    %94 = vector.broadcast %86 : vector<1x60xf32> to vector<8x60xf32>
    %95 = arith.subf %82, %94 : vector<8x60xf32>
    %cst_34 = arith.constant 9.99999974E-6 : f32
    %96 = vector.broadcast %cst_34 : f32 to vector<1x60xf32>
    %97 = arith.addf %93, %96 : vector<1x60xf32>
    %98 = math.rsqrt %97 : vector<1x60xf32>
    %99 = vector.broadcast %98 : vector<1x60xf32> to vector<8x60xf32>
    %100 = arith.mulf %95, %99 : vector<8x60xf32>
    %101 = vector.broadcast %79 : vector<1x60xf32> to vector<8x60xf32>
    %102 = arith.mulf %100, %101 : vector<8x60xf32>
    %103 = vector.broadcast %80 : vector<1x60xf32> to vector<8x60xf32>
    %104 = arith.addf %102, %103 : vector<8x60xf32>
    %c0_35 = arith.constant 0 : index
    %c0_36 = arith.constant 0 : index
    %105 = vector.load %arg7[%c0_35, %c0_36] : memref<60x512xf32, #tpu.memory_space<vmem>>, vector<60x512xf32>
    %cst_37 = arith.constant dense<0.000000e+00> : vector<8x512xf32>
    %106 = tpu.matmul %104, %105, %cst_37 {dimension_numbers = #tpu.dot_dimension_numbers<[1], [0], [0], [1], [0, 0, 1, 1], [], []>} : vector<8x60xf32>, vector<60x512xf32>, vector<8x512xf32> -> vector<8x512xf32>
    %c0_38 = arith.constant 0 : index
    %c0_39 = arith.constant 0 : index
    %107 = vector.load %arg9[%c0_38, %c0_39] : memref<1x512xf32, #tpu.memory_space<vmem>>, vector<1x512xf32>
    %108 = vector.broadcast %107 : vector<1x512xf32> to vector<8x512xf32>
    %109 = arith.addf %106, %108 : vector<8x512xf32>
    %c0_40 = arith.constant 0 : index
    %c0_41 = arith.constant 0 : index
    %110 = vector.load %arg15[%c0_40, %c0_41] : memref<8x512xf32, #tpu.memory_space<vmem>>, vector<8x512xf32>
    tpu.vector_store %arg15[%c0_40, %c0_41], %109 {strides = array<i32>} : memref<8x512xf32, #tpu.memory_space<vmem>>, vector<8x512xf32>,
    %111 = vector.extract_strided_slice %109 {offsets = [0, 0], sizes = [8, 20], strides = [1, 1]} : vector<8x512xf32> to vector<8x20xf32>
    %c0_42 = arith.constant 0 : index
    %c0_43 = arith.constant 0 : index
    %112 = vector.load %arg2[%c0_42, %c0_43] : memref<8x20xf32, #tpu.memory_space<vmem>>, vector<8x20xf32>
    %113 = vector.extract_strided_slice %109 {offsets = [0, 256], sizes = [8, 20], strides = [1, 1]} : vector<8x512xf32> to vector<8x20xf32>
    %cst_44 = arith.constant 5.000000e-01 : f32
    %114 = vector.broadcast %cst_44 : f32 to vector<8x20xf32>
    %115 = arith.mulf %114, %113 : vector<8x20xf32>
    %116 = math.exp %115 : vector<8x20xf32>
    %117 = arith.mulf %112, %116 : vector<8x20xf32>
    %118 = arith.addf %111, %117 : vector<8x20xf32>
    %119 = vector.extract_strided_slice %109 {offsets = [0, 128], sizes = [8, 20], strides = [1, 1]} : vector<8x512xf32> to vector<8x20xf32>
    %c0_45 = arith.constant 0 : index
    %c0_46 = arith.constant 0 : index
    %120 = vector.load %arg3[%c0_45, %c0_46] : memref<8x20xf32, #tpu.memory_space<vmem>>, vector<8x20xf32>
    %121 = vector.extract_strided_slice %109 {offsets = [0, 384], sizes = [8, 20], strides = [1, 1]} : vector<8x512xf32> to vector<8x20xf32>
    %cst_47 = arith.constant 5.000000e-01 : f32
    %122 = vector.broadcast %cst_47 : f32 to vector<8x20xf32>
    %123 = arith.mulf %122, %121 : vector<8x20xf32>
    %124 = math.exp %123 : vector<8x20xf32>
    %125 = arith.mulf %120, %124 : vector<8x20xf32>
    %126 = arith.addf %119, %125 : vector<8x20xf32>
    %c0_48 = arith.constant 0 : index
    %c0_49 = arith.constant 0 : index
    %127 = vector.load %arg11[%c0_48, %c0_49] : memref<9x40xf32, #tpu.memory_space<vmem>>, vector<9x40xf32>
    %c0_50 = arith.constant 0 : index
    %c0_51 = arith.constant 0 : index
    %c0_52 = arith.constant 0 : index
    %128 = vector.load %arg10[%c0_50, %c0_51, %c0_52] : memref<2x20x40xf32, #tpu.memory_space<vmem>>, vector<1x20x40xf32>
    %129 = vector.shape_cast %128 : vector<1x20x40xf32> to vector<20x40xf32>
    %cst_53 = arith.constant dense<0.000000e+00> : vector<8x40xf32>
    %130 = tpu.matmul %118, %129, %cst_53 {dimension_numbers = #tpu.dot_dimension_numbers<[1], [0], [0], [1], [0, 0, 1, 1], [], []>} : vector<8x20xf32>, vector<20x40xf32>, vector<8x40xf32> -> vector<8x40xf32>
    %c1_54 = arith.constant 1 : index
    %c0_55 = arith.constant 0 : index
    %c0_56 = arith.constant 0 : index
    %131 = vector.load %arg10[%c1_54, %c0_55, %c0_56] : memref<2x20x40xf32, #tpu.memory_space<vmem>>, vector<1x20x40xf32>
    %132 = vector.shape_cast %131 : vector<1x20x40xf32> to vector<20x40xf32>
    %cst_57 = arith.constant dense<0.000000e+00> : vector<8x40xf32>
    %133 = tpu.matmul %126, %132, %cst_57 {dimension_numbers = #tpu.dot_dimension_numbers<[1], [0], [0], [1], [0, 0, 1, 1], [], []>} : vector<8x20xf32>, vector<20x40xf32>, vector<8x40xf32> -> vector<8x40xf32>
    %134 = arith.addf %130, %133 : vector<8x40xf32>
    %135 = vector.extract_strided_slice %127 {offsets = [0, 0], sizes = [1, 40], strides = [1, 1]} : vector<9x40xf32> to vector<1x40xf32>
    %136 = vector.broadcast %135 : vector<1x40xf32> to vector<8x40xf32>
    %137 = arith.addf %134, %136 : vector<8x40xf32>
    %138 = vector.extract_strided_slice %127 {offsets = [1, 0], sizes = [1, 40], strides = [1, 1]} : vector<9x40xf32> to vector<1x40xf32>
    %139 = vector.extract_strided_slice %127 {offsets = [2, 0], sizes = [1, 40], strides = [1, 1]} : vector<9x40xf32> to vector<1x40xf32>
    %cst_58 = arith.constant 0.000000e+00 : f32
    %140 = vector.broadcast %cst_58 : f32 to vector<8x40xf32>
    %141 = arith.maximumf %137, %140 : vector<8x40xf32>
    %cst_59 = arith.constant dense<0.000000e+00> : vector<40xf32>
    %142 = vector.multi_reduction <add>, %141, %cst_59 [0] : vector<8x40xf32> to vector<40xf32>
    %143 = vector.shape_cast %142 : vector<40xf32> to vector<1x40xf32>
    %cst_60 = arith.constant 8.000000e+00 : f32
    %144 = vector.broadcast %cst_60 : f32 to vector<1x40xf32>
    %145 = arith.divf %143, %144 : vector<1x40xf32>
    %146 = vector.broadcast %145 : vector<1x40xf32> to vector<8x40xf32>
    %147 = arith.subf %141, %146 : vector<8x40xf32>
    %148 = arith.mulf %147, %147 : vector<8x40xf32>
    %cst_61 = arith.constant dense<0.000000e+00> : vector<40xf32>
    %149 = vector.multi_reduction <add>, %148, %cst_61 [0] : vector<8x40xf32> to vector<40xf32>
    %150 = vector.shape_cast %149 : vector<40xf32> to vector<1x40xf32>
    %cst_62 = arith.constant 8.000000e+00 : f32
    %151 = vector.broadcast %cst_62 : f32 to vector<1x40xf32>
    %152 = arith.divf %150, %151 : vector<1x40xf32>
    %153 = vector.broadcast %145 : vector<1x40xf32> to vector<8x40xf32>
    %154 = arith.subf %141, %153 : vector<8x40xf32>
    %cst_63 = arith.constant 9.99999974E-6 : f32
    %155 = vector.broadcast %cst_63 : f32 to vector<1x40xf32>
    %156 = arith.addf %152, %155 : vector<1x40xf32>
    %157 = math.rsqrt %156 : vector<1x40xf32>
    %158 = vector.broadcast %157 : vector<1x40xf32> to vector<8x40xf32>
    %159 = arith.mulf %154, %158 : vector<8x40xf32>
    %160 = vector.broadcast %138 : vector<1x40xf32> to vector<8x40xf32>
    %161 = arith.mulf %159, %160 : vector<8x40xf32>
    %162 = vector.broadcast %139 : vector<1x40xf32> to vector<8x40xf32>
    %163 = arith.addf %161, %162 : vector<8x40xf32>
    %c0_i32_64 = arith.constant 0 : i32
    %164 = tpu.memref_slice %arg19[%c0_i32_64] : memref<2x!tpu.dma_semaphore, #tpu.memory_space<semaphore_mem>> -> memref<1x!tpu.dma_semaphore, #tpu.memory_space<semaphore_mem>>
    %165 = tpu.memref_squeeze %164 : memref<1x!tpu.dma_semaphore, #tpu.memory_space<semaphore_mem>> -> memref<!tpu.dma_semaphore, #tpu.memory_space<semaphore_mem>>
    tpu.wait_dma2 semaphore(%165 : memref<!tpu.dma_semaphore, #tpu.memory_space<semaphore_mem>>) src(%arg13 : memref<2x40x40xf32, #tpu.memory_space<any>>) dst(%arg17 : memref<2x40x40xf32, #tpu.memory_space<vmem>>)
    %c0_65 = arith.constant 0 : index
    %c0_66 = arith.constant 0 : index
    %c0_67 = arith.constant 0 : index
    %166 = vector.load %arg17[%c0_65, %c0_66, %c0_67] : memref<2x40x40xf32, #tpu.memory_space<vmem>>, vector<1x40x40xf32>
    %167 = vector.shape_cast %166 : vector<1x40x40xf32> to vector<40x40xf32>
    %cst_68 = arith.constant dense<0.000000e+00> : vector<8x40xf32>
    %168 = tpu.matmul %163, %167, %cst_68 {dimension_numbers = #tpu.dot_dimension_numbers<[1], [0], [0], [1], [0, 0, 1, 1], [], []>} : vector<8x40xf32>, vector<40x40xf32>, vector<8x40xf32> -> vector<8x40xf32>
    %169 = vector.extract_strided_slice %127 {offsets = [3, 0], sizes = [1, 40], strides = [1, 1]} : vector<9x40xf32> to vector<1x40xf32>
    %170 = vector.broadcast %169 : vector<1x40xf32> to vector<8x40xf32>
    %171 = arith.addf %168, %170 : vector<8x40xf32>
    %172 = vector.extract_strided_slice %127 {offsets = [4, 0], sizes = [1, 40], strides = [1, 1]} : vector<9x40xf32> to vector<1x40xf32>
    %173 = vector.extract_strided_slice %127 {offsets = [5, 0], sizes = [1, 40], strides = [1, 1]} : vector<9x40xf32> to vector<1x40xf32>
    %cst_69 = arith.constant 0.000000e+00 : f32
    %174 = vector.broadcast %cst_69 : f32 to vector<8x40xf32>
    %175 = arith.maximumf %171, %174 : vector<8x40xf32>
    %cst_70 = arith.constant dense<0.000000e+00> : vector<40xf32>
    %176 = vector.multi_reduction <add>, %175, %cst_70 [0] : vector<8x40xf32> to vector<40xf32>
    %177 = vector.shape_cast %176 : vector<40xf32> to vector<1x40xf32>
    %cst_71 = arith.constant 8.000000e+00 : f32
    %178 = vector.broadcast %cst_71 : f32 to vector<1x40xf32>
    %179 = arith.divf %177, %178 : vector<1x40xf32>
    %180 = vector.broadcast %179 : vector<1x40xf32> to vector<8x40xf32>
    %181 = arith.subf %175, %180 : vector<8x40xf32>
    %182 = arith.mulf %181, %181 : vector<8x40xf32>
    %cst_72 = arith.constant dense<0.000000e+00> : vector<40xf32>
    %183 = vector.multi_reduction <add>, %182, %cst_72 [0] : vector<8x40xf32> to vector<40xf32>
    %184 = vector.shape_cast %183 : vector<40xf32> to vector<1x40xf32>
    %cst_73 = arith.constant 8.000000e+00 : f32
    %185 = vector.broadcast %cst_73 : f32 to vector<1x40xf32>
    %186 = arith.divf %184, %185 : vector<1x40xf32>
    %187 = vector.broadcast %179 : vector<1x40xf32> to vector<8x40xf32>
    %188 = arith.subf %175, %187 : vector<8x40xf32>
    %cst_74 = arith.constant 9.99999974E-6 : f32
    %189 = vector.broadcast %cst_74 : f32 to vector<1x40xf32>
    %190 = arith.addf %186, %189 : vector<1x40xf32>
    %191 = math.rsqrt %190 : vector<1x40xf32>
    %192 = vector.broadcast %191 : vector<1x40xf32> to vector<8x40xf32>
    %193 = arith.mulf %188, %192 : vector<8x40xf32>
    %194 = vector.broadcast %172 : vector<1x40xf32> to vector<8x40xf32>
    %195 = arith.mulf %193, %194 : vector<8x40xf32>
    %196 = vector.broadcast %173 : vector<1x40xf32> to vector<8x40xf32>
    %197 = arith.addf %195, %196 : vector<8x40xf32>
    %c1_75 = arith.constant 1 : index
    %c0_76 = arith.constant 0 : index
    %c0_77 = arith.constant 0 : index
    %198 = vector.load %arg17[%c1_75, %c0_76, %c0_77] : memref<2x40x40xf32, #tpu.memory_space<vmem>>, vector<1x40x40xf32>
    %199 = vector.shape_cast %198 : vector<1x40x40xf32> to vector<40x40xf32>
    %cst_78 = arith.constant dense<0.000000e+00> : vector<8x40xf32>
    %200 = tpu.matmul %197, %199, %cst_78 {dimension_numbers = #tpu.dot_dimension_numbers<[1], [0], [0], [1], [0, 0, 1, 1], [], []>} : vector<8x40xf32>, vector<40x40xf32>, vector<8x40xf32> -> vector<8x40xf32>
    %201 = vector.extract_strided_slice %127 {offsets = [6, 0], sizes = [1, 40], strides = [1, 1]} : vector<9x40xf32> to vector<1x40xf32>
    %202 = vector.broadcast %201 : vector<1x40xf32> to vector<8x40xf32>
    %203 = arith.addf %200, %202 : vector<8x40xf32>
    %204 = vector.extract_strided_slice %127 {offsets = [7, 0], sizes = [1, 40], strides = [1, 1]} : vector<9x40xf32> to vector<1x40xf32>
    %205 = vector.extract_strided_slice %127 {offsets = [8, 0], sizes = [1, 40], strides = [1, 1]} : vector<9x40xf32> to vector<1x40xf32>
    %cst_79 = arith.constant 0.000000e+00 : f32
    %206 = vector.broadcast %cst_79 : f32 to vector<8x40xf32>
    %207 = arith.maximumf %203, %206 : vector<8x40xf32>
    %cst_80 = arith.constant dense<0.000000e+00> : vector<40xf32>
    %208 = vector.multi_reduction <add>, %207, %cst_80 [0] : vector<8x40xf32> to vector<40xf32>
    %209 = vector.shape_cast %208 : vector<40xf32> to vector<1x40xf32>
    %cst_81 = arith.constant 8.000000e+00 : f32
    %210 = vector.broadcast %cst_81 : f32 to vector<1x40xf32>
    %211 = arith.divf %209, %210 : vector<1x40xf32>
    %212 = vector.broadcast %211 : vector<1x40xf32> to vector<8x40xf32>
    %213 = arith.subf %207, %212 : vector<8x40xf32>
    %214 = arith.mulf %213, %213 : vector<8x40xf32>
    %cst_82 = arith.constant dense<0.000000e+00> : vector<40xf32>
    %215 = vector.multi_reduction <add>, %214, %cst_82 [0] : vector<8x40xf32> to vector<40xf32>
    %216 = vector.shape_cast %215 : vector<40xf32> to vector<1x40xf32>
    %cst_83 = arith.constant 8.000000e+00 : f32
    %217 = vector.broadcast %cst_83 : f32 to vector<1x40xf32>
    %218 = arith.divf %216, %217 : vector<1x40xf32>
    %219 = vector.broadcast %211 : vector<1x40xf32> to vector<8x40xf32>
    %220 = arith.subf %207, %219 : vector<8x40xf32>
    %cst_84 = arith.constant 9.99999974E-6 : f32
    %221 = vector.broadcast %cst_84 : f32 to vector<1x40xf32>
    %222 = arith.addf %218, %221 : vector<1x40xf32>
    %223 = math.rsqrt %222 : vector<1x40xf32>
    %224 = vector.broadcast %223 : vector<1x40xf32> to vector<8x40xf32>
    %225 = arith.mulf %220, %224 : vector<8x40xf32>
    %226 = vector.broadcast %204 : vector<1x40xf32> to vector<8x40xf32>
    %227 = arith.mulf %225, %226 : vector<8x40xf32>
    %228 = vector.broadcast %205 : vector<1x40xf32> to vector<8x40xf32>
    %229 = arith.addf %227, %228 : vector<8x40xf32>
    %c1_i32_85 = arith.constant 1 : i32
    %230 = tpu.memref_slice %arg19[%c1_i32_85] : memref<2x!tpu.dma_semaphore, #tpu.memory_space<semaphore_mem>> -> memref<1x!tpu.dma_semaphore, #tpu.memory_space<semaphore_mem>>
    %231 = tpu.memref_squeeze %230 : memref<1x!tpu.dma_semaphore, #tpu.memory_space<semaphore_mem>> -> memref<!tpu.dma_semaphore, #tpu.memory_space<semaphore_mem>>
    tpu.wait_dma2 semaphore(%231 : memref<!tpu.dma_semaphore, #tpu.memory_space<semaphore_mem>>) src(%arg14 : memref<40x768xf32, #tpu.memory_space<any>>) dst(%arg18 : memref<40x768xf32, #tpu.memory_space<vmem>>)
    %c0_86 = arith.constant 0 : index
    %c0_87 = arith.constant 0 : index
    %232 = vector.load %arg18[%c0_86, %c0_87] : memref<40x768xf32, #tpu.memory_space<vmem>>, vector<40x768xf32>
    %cst_88 = arith.constant dense<0.000000e+00> : vector<8x768xf32>
    %233 = tpu.matmul %229, %232, %cst_88 {dimension_numbers = #tpu.dot_dimension_numbers<[1], [0], [0], [1], [0, 0, 1, 1], [], []>} : vector<8x40xf32>, vector<40x768xf32>, vector<8x768xf32> -> vector<8x768xf32>
    %c0_89 = arith.constant 0 : index
    %c0_90 = arith.constant 0 : index
    %234 = vector.load %arg12[%c0_89, %c0_90] : memref<1x768xf32, #tpu.memory_space<vmem>>, vector<1x768xf32>
    %235 = vector.broadcast %234 : vector<1x768xf32> to vector<8x768xf32>
    %236 = arith.addf %233, %235 : vector<8x768xf32>
    %c0_91 = arith.constant 0 : index
    %c0_92 = arith.constant 0 : index
    %237 = vector.load %arg16[%c0_91, %c0_92] : memref<8x768xf32, #tpu.memory_space<vmem>>, vector<8x768xf32>
    tpu.vector_store %arg16[%c0_91, %c0_92], %236 {strides = array<i32>} : memref<8x768xf32, #tpu.memory_space<vmem>>, vector<8x768xf32>,
    return
  }
}

</mosaic_0001>

<bundles_post_ra>
// kernel: multiz_forward.1
= control target key start
LH: loop header
LB: loop body
LE: loop exit
PB: predicated region body
PF: predicated region fallthrough
CT: control target
= control target key end

     0   :  { %s2706_s0 = inlined_call_operand.vmem [shape: f32[8,200], index: 0, kind: input, shape index: {}]   ;;  %s2707_s1 = inlined_call_operand.vmem [shape: f32[8,50], index: 1, kind: input, shape index: {}]   ;;  %s2708_s2 = inlined_call_operand.vmem [shape: f32[8,20], index: 2, kind: input, shape index: {}]   ;;  %s2709_s3 = inlined_call_operand.vmem [shape: f32[8,20], index: 3, kind: input, shape index: {}]   ;;  %s2710_s4 = inlined_call_operand.vmem [shape: f32[200,60], index: 4, kind: input, shape index: {}]   ;;  %s2711_s5 = inlined_call_operand.hbm [shape: f32[50,60], index: 5, kind: input, shape index: {}]   ;;  %s2712_s6 = inlined_call_operand.vmem [shape: f32[2,60,60], index: 6, kind: input, shape index: {}]   ;;  %s2713_s7 = inlined_call_operand.vmem [shape: f32[60,512], index: 7, kind: input, shape index: {}]   ;;  %s2714_s8 = inlined_call_operand.vmem [shape: f32[9,60], index: 8, kind: input, shape index: {}]   ;;  %s2715_s9 = inlined_call_operand.vmem [shape: f32[1,512], index: 9, kind: input, shape index: {}]   ;;  %s2716_s10 = inlined_call_operand.vmem [shape: f32[2,20,40], index: 10, kind: input, shape index: {}]   ;;  %s2717_s11 = inlined_call_operand.hbm [shape: f32[9,40], index: 11, kind: input, shape index: {}]   ;;  %s2718_s12 = inlined_call_operand.hbm [shape: f32[1,768], index: 12, kind: input, shape index: {}]   ;;  %s2719_s13 = inlined_call_operand.hbm [shape: f32[2,40,40], index: 13, kind: input, shape index: {}]   ;;  %s2720_s14 = inlined_call_operand.vmem [shape: f32[40,768], index: 14, kind: input, shape index: {}]   ;;  %s2721_s15 = inlined_call_operand.vmem [shape: f32[8,512], index: 15, kind: output, shape index: {0}]   ;;  %s2722_s16 = inlined_call_operand.vmem [shape: f32[8,768], index: 16, kind: output, shape index: {1}]  }
   0x1   :  { %2724 = sst [smem:[#allocation19_spill]] %s2706_s0 }
   0x2   :  { %22 = vsyncpa [#allocation6], 0 }
   0x3   :  { %23 = vsyncpa [#allocation8], 0  ;;  %s1943_s21 = smov [#allocation7]   ;;  %s1944_s23 = smov [#allocation5]  }
   0x4   :  { %s61_s22 = sshll.u32 %s1943_s21, 4  ;;  %s39_s24 = sshll.u32 %s1944_s23, 4  ;;  %s62_s22 = int_to_ptr.vmem [resolvable:$true] %s61_s22  ;;  %s40_s24 = int_to_ptr.vmem [resolvable:$true] %s39_s24 }
   0x5   :  { %s1863_s25 = scalar_lea.vmem %s62_s22, 256  ;;  %p1868_p1 = scmp.lt.s32.totalorder %s62_s22, %s62_s22 }
   0x6   :  { %p1864_p0 = scmp.ne.s32.totalorder %s62_s22, %s1863_s25  ;;  %p1869_p2 = scmp.lt.s32.totalorder %s1863_s25, %s1863_s25 }
   0x8   :  { %p1870_p3 = por %p1869_p2, %p1868_p1 }
   0xa   :  { %p1871_p4 = pnand %p1870_p3, %p1864_p0 }
   0xc   :  { %1874 = shalt.err (!%p1871_p4)
}
   0xd   :  { %s1945_s26 = smov 128   ;;  %s1946_s27 = smov 8  }
   0xe   :  { %67 = dma.hbm_to_vmem [thread:$0]  %s2717_s11, 256, %s62_s22, [#allocation8], %s1945_s26, %s1945_s26, %s1946_s27  }
   0xf   :  { %s1883_s30 = scalar_lea.vmem %s40_s24, 896  ;;  %p1888_p6 = scmp.lt.s32.totalorder %s40_s24, %s40_s24 }
  0x10   :  { %p1884_p5 = scmp.ne.s32.totalorder %s40_s24, %s1883_s30  ;;  %p1889_p7 = scmp.lt.s32.totalorder %s1883_s30, %s1883_s30 }
  0x12   :  { %p1890_p8 = por %p1889_p7, %p1888_p6 }
  0x14   :  { %p1891_p9 = pnand %p1890_p8, %p1884_p5 }
  0x16   :  { %1894 = shalt.err (!%p1891_p9)
}
  0x17   :  { %45 = dma.hbm_to_vmem [thread:$0]  %s2711_s5, 896, %s40_s24, [#allocation6], %s1945_s26, %s1945_s26, %s1946_s27  }
  0x18   :  { %s1947_s18 = smov [#allocation9]  }
  0x19   :  { %s74_s19 = sshll.u32 %s1947_s18, 4  ;;  %s75_s19 = int_to_ptr.vmem [resolvable:$true] %s74_s19 }
  0x1a   :  { %s1903_s20 = scalar_lea.vmem %s75_s19, 96  ;;  %p1908_p11 = scmp.lt.s32.totalorder %s75_s19, %s75_s19 }
  0x1b   :  { %p1904_p10 = scmp.ne.s32.totalorder %s75_s19, %s1903_s20  ;;  %p1909_p12 = scmp.lt.s32.totalorder %s1903_s20, %s1903_s20 }
  0x1d   :  { %p1910_p13 = por %p1909_p12, %p1908_p11 }
  0x1f   :  { %p1911_p0 = pnand %p1910_p13, %p1904_p10 }
  0x21   :  { %1914 = shalt.err (!%p1911_p0)
}
  0x22   :  { %77 = dma.hbm_to_vmem [thread:$0]  %s2718_s12, 96, %s75_s19, [#allocation8]  }
  0x23   :  { %1935 = dma.done.wait [#allocation6], 896  }
  0x24   :  { %1936 = vsyncadd [#allocation6], 4294966400 }
  0x25   :  { %1937 = dma.done.wait [#allocation8], 352  }
  0x26   :  { %1938 = vsyncadd [#allocation8], 4294966944  ;;  %s1948_s22 = smov [#allocation2]  }
  0x27   :  { %s94_s5 = sshll.u32 %s1948_s22, 4  ;;  %s95_s5 = int_to_ptr.vmem [resolvable:$true] %s94_s5 }
  0x28   :  { %s1923_s23 = scalar_lea.vmem %s95_s5, 1280  ;;  %p1928_p2 = scmp.lt.s32.totalorder %s95_s5, %s95_s5 }
  0x29   :  { %p1924_p1 = scmp.ne.s32.totalorder %s95_s5, %s1923_s23  ;;  %p1929_p3 = scmp.lt.s32.totalorder %s1923_s23, %s1923_s23 }
  0x2b   :  { %p1930_p4 = por %p1929_p3, %p1928_p2 }
  0x2d   :  { %p1931_p5 = pnand %p1930_p4, %p1924_p1 }
  0x2f   :  { %1934 = shalt.err (!%p1931_p5)  }
  0x30   :  { %97 = dma.hbm_to_vmem [thread:$0]  %s2719_s13, 1280, %s95_s5, [#allocation4]  ;;  %v2051_v0 = vld [vmem:[%s2720_s14] sm:$0xff]  ;;  %v2056_v1 = vld [vmem:[%s2720_s14 + $0x8] sm:$0xff]  ;;  %v2061_v2 = vld [vmem:[%s2720_s14 + $0x10] sm:$0xff]  ;;  %v1949_v31 = vmov 0.0  }
  0x31   :  { %v2066_v3 = vld [vmem:[%s2720_s14 + $0x18] sm:$0xff]  ;;  %v2071_v4 = vld [vmem:[%s2720_s14 + $0x20] sm:$0xff]  ;;  %v2076_v5 = vld [vmem:[%s2720_s14 + $0x28] sm:$0xff]  ;;  %319 = vmatprep.subr.mxu1 %v1949_v31  ;;  %1732 = vmatprep.subr.mxu0 %v1949_v31  ;;  %vm1950_vm0 = vmmov 0   ;;  %vm241_vm1 = vcmask 1041408  }
  0x32   :  { %v2081_v6 = vld [vmem:[%s2720_s14 + $0x30] sm:$0xff]  ;;  %v2086_v7 = vld [vmem:[%s2720_s14 + $0x38] sm:$0xff]  ;;  %v2091_v8 = vld [vmem:[%s2720_s14 + $0x40] sm:$0xff]  ;;  %1746 = vmatprep.mubr.msk.f32.mxu0 %vm1950_vm0, %v1949_v31 }
  0x33   :  { %v2096_v9 = vld [vmem:[%s2720_s14 + $0x48] sm:$0xff]  ;;  %v2101_v10 = vld [vmem:[%s2720_s14 + $0x50] sm:$0xff]  ;;  %v2106_v11 = vld [vmem:[%s2720_s14 + $0x58] sm:$0xff] }
  0x34   :  { %v2111_v12 = vld [vmem:[%s2720_s14 + $0x60] sm:$0xff]  ;;  %v2116_v13 = vld [vmem:[%s2720_s14 + $0x68] sm:$0xff]  ;;  %v2121_v14 = vld [vmem:[%s2720_s14 + $0x70] sm:$0xff] }
  0x35   :  { %v2126_v15 = vld [vmem:[%s2720_s14 + $0x78] sm:$0xff]  ;;  %v2131_v16 = vld [vmem:[%s2720_s14 + $0x80] sm:$0xff]  ;;  %v2136_v17 = vld [vmem:[%s2720_s14 + $0x88] sm:$0xff] }
  0x36   :  { %v2141_v18 = vld [vmem:[%s2720_s14 + $0x90] sm:$0xff]  ;;  %v2146_v19 = vld [vmem:[%s2720_s14 + $0x98] sm:$0xff]  ;;  %v2151_v20 = vld [vmem:[%s2720_s14 + $0xa0] sm:$0xff] }
  0x37   :  { %v2156_v21 = vld [vmem:[%s2720_s14 + $0xa8] sm:$0xff]  ;;  %v2161_v22 = vld [vmem:[%s2720_s14 + $0xb0] sm:$0xff]  ;;  %v2166_v23 = vld [vmem:[%s2720_s14 + $0xb8] sm:$0xff] }
  0x38   :  { %v2171_v24 = vld [vmem:[%s2720_s14 + $0xc0] sm:$0xff]  ;;  %v2176_v25 = vld [vmem:[%s2720_s14 + $0xc8] sm:$0xff]  ;;  %v2181_v26 = vld [vmem:[%s2720_s14 + $0xd0] sm:$0xff] }
  0x39   :  { %v2186_v27 = vld [vmem:[%s2720_s14 + $0xd8] sm:$0xff]  ;;  %v2191_v28 = vld [vmem:[%s2720_s14 + $0xe0] sm:$0xff]  ;;  %v2196_v29 = vld [vmem:[%s2720_s14 + $0xe8] sm:$0xff] }
  0x3a   :  { %v219_v30 = vld [vmem:[%s2710_s4 + $0x78] sm:$0xff]  ;;  %v218_v32 = vld [vmem:[%s2710_s4 + $0x70] sm:$0xff]  ;;  %v217_v33 = vld [vmem:[%s2710_s4 + $0x68] sm:$0xff] }
  0x3b   :  { %320 = vmatpush1.msra.mxu1 %v219_v30  ;;  %v216_v34 = vld [vmem:[%s2710_s4 + $0x60] sm:$0xff] }
  0x3c   :  { %321 = vmatprep.subr.mxu1 %v1949_v31 }
  0x3d   :  { %322 = vmatpush1.msra.mxu1 %v218_v32 }
  0x3e   :  { %323 = vmatprep.subr.mxu1 %v1949_v31 }
  0x3f   :  { %199 = vsyncadd [#allocation4 + $0x1], 3840  ;;  %324 = vmatpush1.msra.mxu1 %v217_v33  ;;  %v236_v35 = vld [vmem:[#allocation5 + $0x30] sm:$0x3]  ;;  %v235_v36 = vld [vmem:[#allocation5 + $0x28] sm:$0xff]  ;;  %vm237_vm2 = vcmask 408576  }
  0x40   :  { %325 = vmatprep.subr.mxu1 %v1949_v31  ;;  %v215_v37 = vld [vmem:[%s2710_s4 + $0x58] sm:$0xff]  ;;  %1733 = vmatpush3.msk.msra.mxu0 %vm241_vm1, %v236_v35  ;;  %v234_v38 = vld [vmem:[#allocation5 + $0x20] sm:$0xff]  ;;  %v233_v40 = vld [vmem:[#allocation5 + $0x18] sm:$0xff]  ;;  %s2725_s14 = sld [smem:[#allocation19_spill]]  ;;  %vm315_vm3 = vcmask 588800   ;;  %vm443_vm4 = vcmask 1043456  }
  0x41   :  { %326 = vmatpush1.msra.mxu1 %v216_v34  ;;  %1734 = vmatprep.subr.mxu0 %v1949_v31  ;;  %v214_v39 = vld [vmem:[%s2710_s4 + $0x50] sm:$0xff]  ;;  %v213_v41 = vld [vmem:[%s2710_s4 + $0x48] sm:$0xff]  ;;  %v232_v42 = vld [vmem:[#allocation5 + $0x10] sm:$0xff]  ;;  %vm395_vm5 = vcmask 490496   ;;  %vm906_vm6 = vcmask 162816   ;;  %vm1065_vm7 = vcmask 326656  }
  0x42   :  { %327 = vmatprep.subr.mxu1 %v1949_v31  ;;  %1735 = vmatpush3.msra.mxu0 %v235_v36  ;;  %v212_v43 = vld [vmem:[%s2710_s4 + $0x40] sm:$0xff]  ;;  %v231_v44 = vld [vmem:[#allocation5 + $0x8] sm:$0xff]  ;;  %v230_v46 = vld [vmem:[#allocation5] sm:$0xff] }
  0x43   :  { %328 = vmatpush1.msra.mxu1 %v215_v37  ;;  %1736 = vmatprep.subr.mxu0 %v1949_v31  ;;  %v211_v45 = vld [vmem:[%s2710_s4 + $0x38] sm:$0xff]  ;;  %v210_v47 = vld [vmem:[%s2710_s4 + $0x30] sm:$0xff]  ;;  %v229_v48 = vld [vmem:[%s2707_s1] sm:$0xff] }
  0x44   :  { %329 = vmatprep.subr.mxu1 %v1949_v31  ;;  %1737 = vmatpush3.msra.mxu0 %v234_v38  ;;  %v209_v50 = vld [vmem:[%s2710_s4 + $0x28] sm:$0xff]  ;;  %v208_v51 = vld [vmem:[%s2710_s4 + $0x20] sm:$0xff]  ;;  %v207_v52 = vld [vmem:[%s2710_s4 + $0x18] sm:$0xff] }
  0x45   :  { %330 = vmatpush1.msra.mxu1 %v214_v39  ;;  %1738 = vmatprep.subr.mxu0 %v1949_v31  ;;  %v206_v53 = vld [vmem:[%s2710_s4 + $0x10] sm:$0xff]  ;;  %v205_v54 = vld [vmem:[%s2710_s4 + $0x8] sm:$0xff]  ;;  %v204_v55 = vld [vmem:[%s2710_s4] sm:$0xff] }
  0x46   :  { %331 = vmatprep.subr.mxu1 %v1949_v31  ;;  %1739 = vmatpush3.msra.mxu0 %v233_v40  ;;  %v203_v49 = vld [vmem:[%s2725_s14 + $0x8] sm:$0xff]  ;;  %v228_v56 = vld [vmem:[%s2710_s4 + $0xc0] sm:$0xff]  ;;  %v227_v57 = vld [vmem:[%s2710_s4 + $0xb8] sm:$0xff] }
  0x47   :  { %332 = vmatpush1.msra.mxu1 %v213_v41  ;;  %1740 = vmatprep.subr.mxu0 %v1949_v31  ;;  %v226_v58 = vld [vmem:[%s2710_s4 + $0xb0] sm:$0xff]  ;;  %v225_v59 = vld [vmem:[%s2710_s4 + $0xa8] sm:$0xff]  ;;  %v224_v60 = vld [vmem:[%s2710_s4 + $0xa0] sm:$0xff] }
  0x48   :  { %333 = vmatprep.subr.mxu1 %v1949_v31  ;;  %1741 = vmatpush3.msra.mxu0 %v232_v42  ;;  %v223_v61 = vld [vmem:[%s2710_s4 + $0x98] sm:$0xff]  ;;  %v222_v62 = vld [vmem:[%s2710_s4 + $0x90] sm:$0xff]  ;;  %v221_v63 = vld [vmem:[%s2710_s4 + $0x88] sm:$0xff] }
  0x49   :  { %334 = vmatpush1.msra.mxu1 %v212_v43  ;;  %1742 = vmatprep.subr.mxu0 %v1949_v31  ;;  %v220_v30 = vld [vmem:[%s2710_s4 + $0x80] sm:$0xff]  ;;  %v435_v33 = vld [vmem:[%s2712_s6 + $0x38] sm:$0xf]  ;;  %v434_v34 = vld [vmem:[%s2712_s6 + $0x30] sm:$0xff]  ;;  %v389_v43 = vlaneseq }
  0x4a   :  { %335 = vmatprep.subr.mxu1 %v1949_v31  ;;  %1743 = vmatpush3.msra.mxu0 %v231_v44  ;;  %v202_v32 = vld [vmem:[%s2725_s14] sm:$0xff]  ;;  %v433_v35 = vld [vmem:[%s2712_s6 + $0x28] sm:$0xff]  ;;  %v431_v37 = vld [vmem:[%s2712_s6 + $0x18] sm:$0xff] }
  0x4b   :  { %336 = vmatpush1.msra.mxu1 %v211_v45  ;;  %1744 = vmatprep.subr.mxu0 %v1949_v31  ;;  %v432_v36 = vld [vmem:[%s2712_s6 + $0x20] sm:$0xff]  ;;  %v430_v38 = vld [vmem:[%s2712_s6 + $0x10] sm:$0xff]  ;;  %v429_v39 = vld [vmem:[%s2712_s6 + $0x8] sm:$0xff]  ;;  %v2353_v44 = vshrl.u32 %v389_v43, 7 }
  0x4c   :  { %337 = vmatprep.subr.mxu1 %v1949_v31  ;;  %1745 = vmatpush3.msra.mxu0 %v230_v46  ;;  %v428_v40 = vld [vmem:[%s2712_s6] sm:$0xff] }
  0x4d   :  { %338 = vmatpush1.msra.mxu1 %v210_v47  ;;  %1747 = vmatmul.mubr.msk.f32.vlgmr.msra.gmra.mxu0 %vm237_vm2, %v229_v48  ;;  %v2356_v45 = vsub.s32 0, %v2353_v44  ;;  %v2361_v46 = vld [vmem:[%s2714_s8] sm:$0xff] }
  0x4e   :  { %339 = vmatprep.subr.mxu1 %v1949_v31  ;;  %1651 = vmatprep.mubr.msk.f32.mxu1 %vm315_vm3, %v203_v49 }
  0x4f   :  { %340 = vmatpush1.msra.mxu1 %v209_v50  ;;  %1749 = vmatprep.subr.mxu0 %v1949_v31  ;;  %v392_v47 = vrot.slane %v2361_v46, %v2356_v45 }
  0x50   :  { %341 = vmatprep.subr.mxu1 %v1949_v31  ;;  %1765 = vmatprep.mubr.msk.f32.mxu0 %vm1950_vm0, %v1949_v31 }
  0x51   :  { %342 = vmatpush1.msra.mxu1 %v208_v51  ;;  %1750 = vmatpush3.msk.msra.mxu0 %vm443_vm4, %v435_v33 }
  0x52   :  { %343 = vmatprep.subr.mxu1 %v1949_v31  ;;  %1751 = vmatprep.subr.mxu0 %v1949_v31 }
  0x53   :  { %344 = vmatpush1.msra.mxu1 %v207_v52  ;;  %1752 = vmatpush3.msra.mxu0 %v434_v34 }
  0x54   :  { %345 = vmatprep.subr.mxu1 %v1949_v31  ;;  %1753 = vmatprep.subr.mxu0 %v1949_v31 }
  0x55   :  { %346 = vmatpush1.msra.mxu1 %v206_v53  ;;  %1754 = vmatpush3.msra.mxu0 %v433_v35 }
  0x56   :  { %347 = vmatprep.subr.mxu1 %v1949_v31  ;;  %1755 = vmatprep.subr.mxu0 %v1949_v31 }
  0x57   :  { %348 = vmatpush1.msra.mxu1 %v205_v54  ;;  %1756 = vmatpush3.msra.mxu0 %v432_v36 }
  0x58   :  { %349 = vmatprep.subr.mxu1 %v1949_v31  ;;  %1757 = vmatprep.subr.mxu0 %v1949_v31 }
  0x59   :  { %350 = vmatpush1.msra.mxu1 %v204_v55  ;;  %1758 = vmatpush3.msra.mxu0 %v431_v37 }
  0x5a   :  { %365 = vmatprep.subr.mxu1 %v1949_v31  ;;  %1759 = vmatprep.subr.mxu0 %v1949_v31 }
  0x5b   :  { %366 = vmatpush2.msra.mxu1 %v228_v56  ;;  %1760 = vmatpush3.msra.mxu0 %v430_v38 }
  0x5c   :  { %367 = vmatprep.subr.mxu1 %v1949_v31  ;;  %1761 = vmatprep.subr.mxu0 %v1949_v31 }
  0x5d   :  { %368 = vmatpush2.msra.mxu1 %v227_v57  ;;  %1762 = vmatpush3.msra.mxu0 %v429_v39  ;;  %v2368_v39 = vsub.s32 1, %v2353_v44 }
  0x5e   :  { %369 = vmatprep.subr.mxu1 %v1949_v31  ;;  %1763 = vmatprep.subr.mxu0 %v1949_v31 }
  0x5f   :  { %370 = vmatpush2.msra.mxu1 %v226_v58  ;;  %1764 = vmatpush3.msra.mxu0 %v428_v40  ;;  %v2371_v40 = vsub.s32 2, %v2353_v44 }
  0x60   :  { %371 = vmatprep.subr.mxu1 %v1949_v31  ;;  %1768 = vmatprep.subr.mxu0 %v1949_v31 }
  0x61   :  { %372 = vmatpush2.msra.mxu1 %v225_v59 }
  0x62   :  { %373 = vmatprep.subr.mxu1 %v1949_v31 }
  0x63   :  { %374 = vmatpush2.msra.mxu1 %v224_v60 }
  0x64   :  { %375 = vmatprep.subr.mxu1 %v1949_v31 }
  0x65   :  { %376 = vmatpush2.msra.mxu1 %v223_v61 }
  0x66   :  { %377 = vmatprep.subr.mxu1 %v1949_v31 }
  0x67   :  { %378 = vmatpush2.msra.mxu1 %v222_v62 }
  0x68   :  { %379 = vmatprep.subr.mxu1 %v1949_v31 }
  0x69   :  { %380 = vmatpush2.msra.mxu1 %v221_v63 }
  0x6a   :  { %381 = vmatprep.subr.mxu1 %v1949_v31 }
  0x6b   :  { %382 = vmatpush2.msra.mxu1 %v220_v30 }
  0x6c   :  { %384 = vmatmul.mubr.f32.vlgmr.msra.gmra.mxu1 %v202_v32 }
  0x6d   :  { %874 = vmatprep.mubr.f32.mxu1 %v1949_v31 }
 0x10d   :  { %v311_v41 = vpop.f32.mrf.mxu0 }
 0x10f   :  { %v1748_v42 = vpop.f32.mrf.mxu0 }
 0x12c   :  { %v385_v48 = vpop.f32.mrf.mxu1 }
 0x12d   :  { %v386_v49 = vadd.f32 %v385_v48, %v311_v41  ;;  %v421_v41 = vrot.slane %v2361_v46, %v2368_v39 }
 0x12e   :  { %v387_v50 = vpop.f32.mrf.mxu1 }
 0x12f   :  { %v393_v51 = vadd.f32 %v392_v47, %v386_v49  ;;  %v426_v47 = vrot.slane %v2361_v46, %v2371_v40  ;;  %v1661_v50 = vld [vmem:[%s2712_s6 + $0x78] sm:$0xf] }
 0x131   :  { %v394_v52 = vmax.f32 %v393_v51, 0.0  ;;  %v1660_v51 = vld [vmem:[%s2712_s6 + $0x70] sm:$0xff] }
 0x133   :  { %v396_v53 = vsel %vm395_vm5, %v394_v52, 0.0 }
 0x134   :  { %v397_v54 = vrot.slane %v396_v53, 4 }
 0x136   :  { %v398_v55 = vadd.f32 %v397_v54, %v396_v53  ;;  %v1658_v53 = vld [vmem:[%s2712_s6 + $0x60] sm:$0xff]  ;;  %v1657_v54 = vld [vmem:[%s2712_s6 + $0x58] sm:$0xff] }
 0x138   :  { %v399_v56 = vrot.slane %v398_v55, 2 }
 0x13a   :  { %v400_v57 = vadd.f32 %v399_v56, %v398_v55  ;;  %v1656_v55 = vld [vmem:[%s2712_s6 + $0x50] sm:$0xff]  ;;  %v1655_v56 = vld [vmem:[%s2712_s6 + $0x48] sm:$0xff] }
 0x13c   :  { %v401_v58 = vrot.slane %v400_v57, 1 }
 0x13e   :  { %v402_v59 = vadd.f32 %v401_v58, %v400_v57  ;;  %v1654_v57 = vld [vmem:[%s2712_s6 + $0x40] sm:$0xff]  ;;  %v2413_v58 = vsub.s32 3, %v2353_v44 }
 0x140   :  { %v404_v60 = vmul.f32 0.125, %v402_v59  ;;  %v439_v59 = vrot.slane %v2361_v46, %v2413_v58 }
 0x142   :  { %v405_v61 = vsub.f32 %v394_v52, %v404_v60  ;;  %v1659_v52 = vld [vmem:[%s2712_s6 + $0x68] sm:$0xff] }
 0x144   :  { %v406_v62 = vmul.f32 %v405_v61, %v405_v61 }
 0x146   :  { %v407_v63 = vsel %vm395_vm5, %v406_v62, 0.0 }
 0x147   :  { %v408_v30 = vrot.slane %v407_v63, 4 }
 0x149   :  { %v409_v32 = vadd.f32 %v408_v30, %v407_v63 }
 0x14b   :  { %v410_v33 = vrot.slane %v409_v32, 2 }
 0x14d   :  { %v411_v34 = vadd.f32 %v410_v33, %v409_v32 }
 0x14f   :  { %v412_v35 = vrot.slane %v411_v34, 1 }
 0x151   :  { %v413_v36 = vadd.f32 %v412_v35, %v411_v34 }
 0x153   :  { %v414_v37 = vmul.f32 0.125, %v413_v36 }
 0x155   :  { %v415_v38 = vadd.f32 1e-05, %v414_v37 }
 0x157   :  { %1839 = vrsqrt.f32 %v415_v38 }
 0x164   :  { %v1840_v42 = vpop.eup %1839 }
 0x165   :  { %v417_v43 = vmul.f32 %v1840_v42, %v405_v61 }
 0x167   :  { %v422_v48 = vmul.f32 %v421_v41, %v417_v43 }
 0x169   :  { %v427_v49 = vadd.f32 %v426_v47, %v422_v48 }
 0x16b   :  { %1766 = vmatmul.mubr.msk.f32.vlgmr.msra.gmra.mxu0 %vm395_vm5, %v427_v49 }
 0x16c   :  { %1784 = vmatprep.mubr.msk.f32.mxu0 %vm1950_vm0, %v1949_v31  ;;  %1769 = vmatpush3.msk.msra.mxu0 %vm443_vm4, %v1661_v50 }
 0x16d   :  { %1770 = vmatprep.subr.mxu0 %v1949_v31 }
 0x16e   :  { %1771 = vmatpush3.msra.mxu0 %v1660_v51 }
 0x16f   :  { %1772 = vmatprep.subr.mxu0 %v1949_v31 }
 0x170   :  { %1773 = vmatpush3.msra.mxu0 %v1659_v52 }
 0x171   :  { %1774 = vmatprep.subr.mxu0 %v1949_v31 }
 0x172   :  { %1775 = vmatpush3.msra.mxu0 %v1658_v53 }
 0x173   :  { %1776 = vmatprep.subr.mxu0 %v1949_v31 }
 0x174   :  { %1777 = vmatpush3.msra.mxu0 %v1657_v54 }
 0x175   :  { %1778 = vmatprep.subr.mxu0 %v1949_v31 }
 0x176   :  { %1779 = vmatpush3.msra.mxu0 %v1656_v55  ;;  %v2420_v55 = vsub.s32 4, %v2353_v44 }
 0x177   :  { %1780 = vmatprep.subr.mxu0 %v1949_v31 }
 0x178   :  { %1781 = vmatpush3.msra.mxu0 %v1655_v56  ;;  %v2423_v56 = vsub.s32 5, %v2353_v44 }
 0x179   :  { %1782 = vmatprep.subr.mxu0 %v1949_v31 }
 0x17a   :  { %1783 = vmatpush3.msra.mxu0 %v1654_v57  ;;  %v542_v57 = vrot.slane %v2361_v46, %v2420_v55 }
 0x22b   :  { %v513_v60 = vpop.f32.mrf.mxu0 }
 0x22c   :  { %v514_v61 = vadd.f32 %v513_v60, %v439_v59 }
 0x22d   :  { %v1767_v62 = vpop.f32.mrf.mxu0 }
 0x22e   :  { %v517_v63 = vmax.f32 %v514_v61, 0.0  ;;  %v547_v61 = vrot.slane %v2361_v46, %v2423_v56 }
 0x230   :  { %v518_v30 = vsel %vm395_vm5, %v517_v63, 0.0 }
 0x231   :  { %v519_v32 = vrot.slane %v518_v30, 4 }
 0x233   :  { %v520_v33 = vadd.f32 %v519_v32, %v518_v30  ;;  %v699_v30 = vld [vmem:[%s2713_s7 + $0xe8] sm:$0xf]  ;;  %v701_v32 = vld [vmem:[%s2713_s7 + $0xf8] sm:$0xf] }
 0x234   :  { %1665 = vmatprep.subr.msk.mxu0 %vm443_vm4, %v699_v30  ;;  %1668 = vmatprep.subr.msk.mxu1 %vm443_vm4, %v701_v32  ;;  %v677_v30 = vld [vmem:[%s2713_s7 + $0x38] sm:$0xff]  ;;  %v674_v32 = vld [vmem:[%s2713_s7 + $0x20] sm:$0xff] }
 0x235   :  { %v521_v34 = vrot.slane %v520_v33, 2 }
 0x237   :  { %v522_v35 = vadd.f32 %v521_v34, %v520_v33  ;;  %v698_v33 = vld [vmem:[%s2713_s7 + $0xe0] sm:$0xf]  ;;  %v700_v34 = vld [vmem:[%s2713_s7 + $0xf0] sm:$0xf] }
 0x238   :  { %1669 = vmatpush1.msk.msra.mxu1 %vm443_vm4, %v700_v34  ;;  %v671_v34 = vld [vmem:[%s2713_s7 + $0x8] sm:$0xff] }
 0x239   :  { %v523_v36 = vrot.slane %v522_v35, 1 }
 0x23b   :  { %v524_v37 = vadd.f32 %v523_v36, %v522_v35  ;;  %v695_v35 = vld [vmem:[%s2713_s7 + $0xc8] sm:$0xff]  ;;  %v697_v36 = vld [vmem:[%s2713_s7 + $0xd8] sm:$0xff] }
 0x23c   :  { %828 = vmatprep.subr.mxu1 %v697_v36  ;;  %v670_v36 = vld [vmem:[%s2713_s7] sm:$0xff] }
 0x23d   :  { %v525_v38 = vmul.f32 0.125, %v524_v37  ;;  %v694_v37 = vld [vmem:[%s2713_s7 + $0xc0] sm:$0xff] }
 0x23f   :  { %v526_v41 = vsub.f32 %v517_v63, %v525_v38  ;;  %v696_v38 = vld [vmem:[%s2713_s7 + $0xd0] sm:$0xff] }
 0x240   :  { %829 = vmatpush1.msra.mxu1 %v696_v38  ;;  %v560_v38 = vsub.s32 6, %v2353_v44 }
 0x241   :  { %v527_v42 = vmul.f32 %v526_v41, %v526_v41 }
 0x243   :  { %v528_v43 = vsel %vm395_vm5, %v527_v42, 0.0  ;;  %v693_v42 = vld [vmem:[%s2713_s7 + $0xb8] sm:$0xff] }
 0x244   :  { %v529_v47 = vrot.slane %v528_v43, 4  ;;  %830 = vmatprep.subr.mxu1 %v693_v42 }
 0x246   :  { %v530_v48 = vadd.f32 %v529_v47, %v528_v43  ;;  %v690_v43 = vld [vmem:[%s2713_s7 + $0xa0] sm:$0xff]  ;;  %v692_v47 = vld [vmem:[%s2713_s7 + $0xb0] sm:$0xff] }
 0x247   :  { %831 = vmatpush1.msra.mxu1 %v692_v47 }
 0x248   :  { %v531_v49 = vrot.slane %v530_v48, 2 }
 0x24a   :  { %v532_v50 = vadd.f32 %v531_v49, %v530_v48  ;;  %v687_v48 = vld [vmem:[%s2713_s7 + $0x88] sm:$0xff]  ;;  %v689_v49 = vld [vmem:[%s2713_s7 + $0x98] sm:$0xff] }
 0x24b   :  { %832 = vmatprep.subr.mxu1 %v689_v49 }
 0x24c   :  { %v533_v51 = vrot.slane %v532_v50, 1 }
 0x24e   :  { %v534_v52 = vadd.f32 %v533_v51, %v532_v50  ;;  %v686_v50 = vld [vmem:[%s2713_s7 + $0x80] sm:$0xff]  ;;  %v688_v51 = vld [vmem:[%s2713_s7 + $0x90] sm:$0xff] }
 0x24f   :  { %833 = vmatpush1.msra.mxu1 %v688_v51 }
 0x250   :  { %v535_v53 = vmul.f32 0.125, %v534_v52  ;;  %v683_v52 = vld [vmem:[%s2713_s7 + $0x68] sm:$0xff] }
 0x252   :  { %v536_v54 = vadd.f32 1e-05, %v535_v53  ;;  %v685_v53 = vld [vmem:[%s2713_s7 + $0x78] sm:$0xff] }
 0x253   :  { %834 = vmatprep.subr.mxu1 %v685_v53 }
 0x254   :  { %1841 = vrsqrt.f32 %v536_v54  ;;  %v682_v54 = vld [vmem:[%s2713_s7 + $0x60] sm:$0xff] }
 0x261   :  { %v1842_v59 = vpop.eup %1841 }
 0x262   :  { %v538_v60 = vmul.f32 %v1842_v59, %v526_v41  ;;  %v691_v41 = vld [vmem:[%s2713_s7 + $0xa8] sm:$0xff] }
 0x263   :  { %v679_v59 = vld [vmem:[%s2713_s7 + $0x48] sm:$0xff] }
 0x264   :  { %v543_v62 = vmul.f32 %v542_v57, %v538_v60  ;;  %v684_v57 = vld [vmem:[%s2713_s7 + $0x70] sm:$0xff]  ;;  %v681_v60 = vld [vmem:[%s2713_s7 + $0x58] sm:$0xff] }
 0x265   :  { %835 = vmatpush1.msra.mxu1 %v684_v57 }
 0x266   :  { %v548_v63 = vadd.f32 %v547_v61, %v543_v62  ;;  %836 = vmatprep.subr.mxu1 %v681_v60  ;;  %v678_v61 = vld [vmem:[%s2713_s7 + $0x40] sm:$0xff]  ;;  %v680_v62 = vld [vmem:[%s2713_s7 + $0x50] sm:$0xff] }
 0x267   :  { %837 = vmatpush1.msra.mxu1 %v680_v62 }
 0x268   :  { %1785 = vmatmul.mubr.msk.f32.vlgmr.msra.gmra.mxu0 %vm395_vm5, %v548_v63  ;;  %v675_v63 = vld [vmem:[%s2713_s7 + $0x28] sm:$0xff]  ;;  %838 = vmatprep.subr.mxu1 %v677_v30 }
 0x269   :  { %803 = vmatprep.mubr.f32.mxu0 %v1949_v31  ;;  %1666 = vmatpush1.msk.msra.mxu0 %vm443_vm4, %v698_v33  ;;  %v676_v33 = vld [vmem:[%s2713_s7 + $0x30] sm:$0xff] }
 0x26a   :  { %757 = vmatprep.subr.mxu0 %v695_v35  ;;  %839 = vmatpush1.msra.mxu1 %v676_v33  ;;  %v673_v35 = vld [vmem:[%s2713_s7 + $0x18] sm:$0xff] }
 0x26b   :  { %758 = vmatpush1.msra.mxu0 %v694_v37  ;;  %840 = vmatprep.subr.mxu1 %v673_v35  ;;  %v672_v37 = vld [vmem:[%s2713_s7 + $0x10] sm:$0xff] }
 0x26c   :  { %759 = vmatprep.subr.mxu0 %v691_v41  ;;  %841 = vmatpush1.msra.mxu1 %v672_v37  ;;  %v561_v41 = vrot.slane %v2361_v46, %v560_v38 }
 0x26d   :  { %760 = vmatpush1.msra.mxu0 %v690_v43  ;;  %1796 = vmatprep.subr.mxu1 %v1949_v31 }
 0x26e   :  { %761 = vmatprep.subr.mxu0 %v687_v48 }
 0x26f   :  { %762 = vmatpush1.msra.mxu0 %v686_v50 }
 0x270   :  { %763 = vmatprep.subr.mxu0 %v683_v52 }
 0x271   :  { %764 = vmatpush1.msra.mxu0 %v682_v54 }
 0x272   :  { %765 = vmatprep.subr.mxu0 %v679_v59 }
 0x273   :  { %766 = vmatpush1.msra.mxu0 %v678_v61 }
 0x274   :  { %767 = vmatprep.subr.mxu0 %v675_v63 }
 0x275   :  { %768 = vmatpush1.msra.mxu0 %v674_v32 }
 0x276   :  { %769 = vmatprep.subr.mxu0 %v671_v34 }
 0x277   :  { %770 = vmatpush1.msra.mxu0 %v670_v36 }
 0x278   :  { %1787 = vmatprep.subr.mxu0 %v1949_v31 }
 0x328   :  { %v634_v42 = vpop.f32.mrf.mxu0 }
 0x329   :  { %v635_v43 = vadd.f32 %v634_v42, %v561_v41  ;;  %v662_v41 = vsub.s32 7, %v2353_v44 }
 0x32a   :  { %v1786_v47 = vpop.f32.mrf.mxu0 }
 0x32b   :  { %v638_v48 = vmax.f32 %v635_v43, 0.0  ;;  %v663_v42 = vrot.slane %v2361_v46, %v662_v41  ;;  %v901_v46 = vld [vmem:[%s2716_s10 + $0x10] sm:$0xf] }
 0x32d   :  { %v639_v49 = vsel %vm395_vm5, %v638_v48, 0.0 }
 0x32e   :  { %v640_v50 = vrot.slane %v639_v49, 4 }
 0x330   :  { %v641_v51 = vadd.f32 %v640_v50, %v639_v49 }
 0x332   :  { %v642_v52 = vrot.slane %v641_v51, 2 }
 0x334   :  { %v643_v53 = vadd.f32 %v642_v52, %v641_v51  ;;  %v2555_v51 = vld [vmem:[#allocation7 + $0x8] ss:$0 sm:$0xff]  ;;  %v1673_v52 = vld [vmem:[%s2716_s10 + $0x28] sm:$0xf] }
 0x336   :  { %v644_v54 = vrot.slane %v643_v53, 1 }
 0x338   :  { %v645_v57 = vadd.f32 %v644_v54, %v643_v53  ;;  %v900_v53 = vld [vmem:[%s2716_s10 + $0x8] sm:$0xff]  ;;  %v1672_v54 = vld [vmem:[%s2716_s10 + $0x20] sm:$0xff] }
 0x33a   :  { %v646_v59 = vmul.f32 0.125, %v645_v57  ;;  %v899_v57 = vld [vmem:[%s2716_s10] sm:$0xff] }
 0x33c   :  { %v647_v60 = vsub.f32 %v638_v48, %v646_v59  ;;  %v1664_v48 = vld [vmem:[%s2714_s8 + $0x8] ss:$0 sm:$0xff]  ;;  %v1671_v59 = vld [vmem:[%s2716_s10 + $0x18] sm:$0xff] }
 0x33e   :  { %v648_v61 = vmul.f32 %v647_v60, %v647_v60 }
 0x340   :  { %v649_v62 = vsel %vm395_vm5, %v648_v61, 0.0 }
 0x341   :  { %v650_v63 = vrot.slane %v649_v62, 4 }
 0x343   :  { %v651_v30 = vadd.f32 %v650_v63, %v649_v62 }
 0x345   :  { %v652_v32 = vrot.slane %v651_v30, 2 }
 0x347   :  { %v653_v33 = vadd.f32 %v652_v32, %v651_v30 }
 0x349   :  { %v654_v34 = vrot.slane %v653_v33, 1 }
 0x34b   :  { %v655_v35 = vadd.f32 %v654_v34, %v653_v33 }
 0x34d   :  { %v656_v36 = vmul.f32 0.125, %v655_v35 }
 0x34f   :  { %v657_v37 = vadd.f32 1e-05, %v656_v36 }
 0x351   :  { %1843 = vrsqrt.f32 %v657_v37 }
 0x35e   :  { %v1844_v43 = vpop.eup %1843 }
 0x35f   :  { %v659_v47 = vmul.f32 %v1844_v43, %v647_v60  ;;  %v702_v60 = vld [vmem:[%s2715_s9] sm:$0xf] }
 0x360   :  { %v707_v61 = vrot.slane %v702_v60, %v2356_v45  ;;  %v715_v62 = vrot.slane %v702_v60, %v2371_v40  ;;  %v711_v63 = vrot.slane %v702_v60, %v2368_v39  ;;  %v719_v30 = vrot.slane %v702_v60, %v2413_v58 }
 0x361   :  { %v664_v49 = vmul.f32 %v663_v42, %v659_v47 }
 0x363   :  { %v669_v50 = vadd.f32 %v1664_v48, %v664_v49 }
 0x365   :  { %1667 = vmatmul.mubr.msk.f32.vlgmr.msra.gmra.mxu0 %vm395_vm5, %v669_v50  ;;  %1670 = vmatmul.mubr.msk.f32.vlgmr.msra.gmra.mxu1 %vm395_vm5, %v669_v50 }
 0x366   :  { %1802 = vmatprep.mubr.msk.f32.mxu1 %vm1950_vm0, %v1949_v31  ;;  %1793 = vmatprep.mubr.msk.f32.mxu0 %vm1950_vm0, %v1949_v31 }
 0x367   :  { %1797 = vmatpush3.msk.msra.mxu1 %vm443_vm4, %v901_v46  ;;  %1788 = vmatpush3.msk.msra.mxu0 %vm443_vm4, %v1673_v52  ;;  %v885_v46 = vld [vmem:[%s2708_s2] sm:$0xff] }
 0x368   :  { %1798 = vmatprep.subr.mxu1 %v1949_v31  ;;  %1789 = vmatprep.subr.mxu0 %v1949_v31 }
 0x369   :  { %1799 = vmatpush3.msra.mxu1 %v900_v53  ;;  %1790 = vmatpush3.msra.mxu0 %v1672_v54  ;;  %v891_v53 = vld [vmem:[%s2709_s3] sm:$0xff] }
 0x36a   :  { %1800 = vmatprep.subr.mxu1 %v1949_v31  ;;  %1791 = vmatprep.subr.mxu0 %v1949_v31 }
 0x36b   :  { %1801 = vmatpush3.msra.mxu1 %v899_v57  ;;  %1792 = vmatpush3.msra.mxu0 %v1671_v59 }
 0x425   :  { %v805_v32 = vpop.f32.mrf.mxu0  ;;  %v876_v33 = vpop.f32.mrf.mxu1 }
 0x426   :  { %v806_v34 = vadd.f32 %v805_v32, %v707_v61  ;;  %v877_v35 = vadd.f32 %v876_v33, %v715_v62  ;;  %v2603_v62 = vld [vmem:[#allocation7] sm:$0xff] }
 0x427   :  { %v807_v36 = vpop.f32.mrf.mxu0  ;;  %v878_v37 = vpop.f32.mrf.mxu1 }
 0x428   :  { %881 = vst [vmem:[%s2721_s15] sm:$0xff] %v806_v34  ;;  %883 = vst [vmem:[%s2721_s15 + $0x10] sm:$0xff] %v877_v35  ;;  %v886_v42 = vmul.f32 0.5, %v877_v35  ;;  %v808_v43 = vadd.f32 %v807_v36, %v711_v63  ;;  %v879_v47 = vadd.f32 %v878_v37, %v719_v30  ;;  %v1062_v30 = vrot.slane %v2603_v62, %v2356_v45 }
 0x42a   :  { %v887_v48 = vmul.f32 1.442695, %v886_v42  ;;  %882 = vst [vmem:[%s2721_s15 + $0x8] sm:$0xff] %v808_v43  ;;  %884 = vst [vmem:[%s2721_s15 + $0x18] sm:$0xff] %v879_v47  ;;  %v892_v49 = vmul.f32 0.5, %v879_v47 }
 0x42c   :  { %1845 = vpow2.f32 %v887_v48  ;;  %v893_v50 = vmul.f32 1.442695, %v892_v49 }
 0x42e   :  { %1847 = vpow2.f32 %v893_v50 }
 0x439   :  { %v1846_v52 = vpop.eup %1845 }
 0x43a   :  { %v889_v54 = vmul.f32 %v1846_v52, %v885_v46 }
 0x43b   :  { %v1848_v57 = vpop.eup %1847 }
 0x43c   :  { %v890_v59 = vadd.f32 %v889_v54, %v806_v34  ;;  %v895_v60 = vmul.f32 %v1848_v57, %v891_v53 }
 0x43e   :  { %1803 = vmatmul.mubr.msk.f32.vlgmr.msra.gmra.mxu1 %vm906_vm6, %v890_v59  ;;  %v896_v61 = vadd.f32 %v895_v60, %v808_v43 }
 0x440   :  { %1794 = vmatmul.mubr.msk.f32.vlgmr.msra.gmra.mxu0 %vm906_vm6, %v896_v61 }
 0x4fe   :  { %v1055_v63 = vpop.f32.mrf.mxu1 }
 0x500   :  { %v979_v32 = vpop.f32.mrf.mxu0  ;;  %v1804_v33 = vpop.f32.mrf.mxu1 }
 0x501   :  { %v1056_v35 = vadd.f32 %v1055_v63, %v979_v32 }
 0x502   :  { %v1795_v36 = vpop.f32.mrf.mxu0 }
 0x503   :  { %v1063_v37 = vadd.f32 %v1062_v30, %v1056_v35  ;;  %v1090_v36 = vrot.slane %v2603_v62, %v2368_v39 }
 0x505   :  { %v1064_v42 = vmax.f32 %v1063_v37, 0.0 }
 0x507   :  { %v1066_v47 = vsel %vm1065_vm7, %v1064_v42, 0.0 }
 0x508   :  { %v1067_v34 = vrot.slane %v1066_v47, 4 }
 0x50a   :  { %v1068_v48 = vadd.f32 %v1067_v34, %v1066_v47 }
 0x50c   :  { %v1069_v49 = vrot.slane %v1068_v48, 2 }
 0x50e   :  { %v1070_v43 = vadd.f32 %v1069_v49, %v1068_v48 }
 0x510   :  { %v1071_v50 = vrot.slane %v1070_v43, 1 }
 0x512   :  { %v1072_v46 = vadd.f32 %v1071_v50, %v1070_v43 }
 0x514   :  { %v1073_v52 = vmul.f32 0.125, %v1072_v46 }
 0x516   :  { %v1074_v53 = vsub.f32 %v1064_v42, %v1073_v52  ;;  %v1095_v42 = vrot.slane %v2603_v62, %v2371_v40 }
 0x518   :  { %v1075_v54 = vmul.f32 %v1074_v53, %v1074_v53 }
 0x51a   :  { %v1076_v57 = vsel %vm1065_vm7, %v1075_v54, 0.0 }
 0x51b   :  { %v1077_v59 = vrot.slane %v1076_v57, 4 }
 0x51d   :  { %v1078_v60 = vadd.f32 %v1077_v59, %v1076_v57 }
 0x51f   :  { %v1079_v61 = vrot.slane %v1078_v60, 2 }
 0x521   :  { %v1080_v63 = vadd.f32 %v1079_v61, %v1078_v60 }
 0x523   :  { %v1081_v30 = vrot.slane %v1080_v63, 1 }
 0x525   :  { %v1082_v32 = vadd.f32 %v1081_v30, %v1080_v63 }
 0x527   :  { %v1083_v33 = vmul.f32 0.125, %v1082_v32 }
 0x529   :  { %v1084_v35 = vadd.f32 1e-05, %v1083_v33 }
 0x52b   :  { %1849 = vrsqrt.f32 %v1084_v35 }
 0x538   :  { %v1850_v37 = vpop.eup %1849 }
 0x539   :  { %v1086_v47 = vmul.f32 %v1850_v37, %v1074_v53 }
 0x53b   :  { %v1091_v34 = vmul.f32 %v1090_v36, %v1086_v47 }
 0x53d   :  { %v1096_v48 = vadd.f32 %v1095_v42, %v1091_v34 }
 0x53e   :  { %1939 = dma.done.wait [#allocation4], 1280 }
 0x53f   :  { %1940 = vsyncadd [#allocation4], 4294966016  ;;  %1805 = vmatprep.subr.mxu0 %v1949_v31  ;;  %1815 = vmatprep.mubr.msk.f32.mxu0 %vm1950_vm0, %v1949_v31  ;;  %v1105_v49 = vld [vmem:[#allocation2 + $0x20] sm:$0xff]  ;;  %v1104_v43 = vld [vmem:[#allocation2 + $0x18] sm:$0xff]  ;;  %v1109_v61 = vrot.slane %v2603_v62, %v2413_v58 }
 0x540   :  { %1818 = vmatprep.subr.mxu1 %v1949_v31  ;;  %1828 = vmatprep.mubr.msk.f32.mxu1 %vm1950_vm0, %v1949_v31  ;;  %v1103_v50 = vld [vmem:[#allocation2 + $0x10] sm:$0xff]  ;;  %v1102_v46 = vld [vmem:[#allocation2 + $0x8] sm:$0xff]  ;;  %v1101_v52 = vld [vmem:[#allocation2] sm:$0xff] }
 0x541   :  { %1806 = vmatpush3.msra.mxu0 %v1105_v49  ;;  %v1220_v53 = vld [vmem:[#allocation2 + $0x48] sm:$0xff]  ;;  %v1219_v54 = vld [vmem:[#allocation2 + $0x40] sm:$0xff]  ;;  %v1218_v57 = vld [vmem:[#allocation2 + $0x38] sm:$0xff] }
 0x542   :  { %1807 = vmatprep.subr.mxu0 %v1949_v31  ;;  %1819 = vmatpush3.msra.mxu1 %v1220_v53  ;;  %v1217_v59 = vld [vmem:[#allocation2 + $0x30] sm:$0xff]  ;;  %v1216_v60 = vld [vmem:[#allocation2 + $0x28] sm:$0xff] }
 0x543   :  { %1808 = vmatpush3.msra.mxu0 %v1104_v43  ;;  %1820 = vmatprep.subr.mxu1 %v1949_v31 }
 0x544   :  { %1809 = vmatprep.subr.mxu0 %v1949_v31  ;;  %1821 = vmatpush3.msra.mxu1 %v1219_v54 }
 0x545   :  { %1810 = vmatpush3.msra.mxu0 %v1103_v50  ;;  %1822 = vmatprep.subr.mxu1 %v1949_v31 }
 0x546   :  { %1811 = vmatprep.subr.mxu0 %v1949_v31  ;;  %1823 = vmatpush3.msra.mxu1 %v1218_v57 }
 0x547   :  { %1812 = vmatpush3.msra.mxu0 %v1102_v46  ;;  %1824 = vmatprep.subr.mxu1 %v1949_v31 }
 0x548   :  { %1813 = vmatprep.subr.mxu0 %v1949_v31  ;;  %1825 = vmatpush3.msra.mxu1 %v1217_v59 }
 0x549   :  { %1814 = vmatpush3.msra.mxu0 %v1101_v52  ;;  %1826 = vmatprep.subr.mxu1 %v1949_v31 }
 0x54a   :  { %1816 = vmatmul.mubr.msk.f32.vlgmr.msra.gmra.mxu0 %vm1065_vm7, %v1096_v48  ;;  %1827 = vmatpush3.msra.mxu1 %v1216_v60 }
 0x54b   :  { %1421 = vmatprep.subr.mxu0 %v2176_v25  ;;  %1492 = vmatprep.subr.mxu1 %v2186_v27 }
 0x60a   :  { %v1179_v63 = vpop.f32.mrf.mxu0 }
 0x60b   :  { %v1180_v30 = vadd.f32 %v1179_v63, %v1109_v61 }
 0x60c   :  { %v1817_v32 = vpop.f32.mrf.mxu0 }
 0x60d   :  { %v1183_v33 = vmax.f32 %v1180_v30, 0.0  ;;  %v1208_v30 = vrot.slane %v2603_v62, %v2420_v55 }
 0x60f   :  { %v1184_v35 = vsel %vm1065_vm7, %v1183_v33, 0.0 }
 0x610   :  { %v1185_v36 = vrot.slane %v1184_v35, 4 }
 0x612   :  { %v1186_v37 = vadd.f32 %v1185_v36, %v1184_v35 }
 0x614   :  { %v1187_v47 = vrot.slane %v1186_v37, 2 }
 0x616   :  { %v1188_v42 = vadd.f32 %v1187_v47, %v1186_v37  ;;  %v1224_v47 = vrot.slane %v2603_v62, %v560_v38 }
 0x618   :  { %v1189_v34 = vrot.slane %v1188_v42, 1 }
 0x61a   :  { %v1190_v48 = vadd.f32 %v1189_v34, %v1188_v42 }
 0x61c   :  { %v1191_v49 = vmul.f32 0.125, %v1190_v48 }
 0x61e   :  { %v1192_v43 = vsub.f32 %v1183_v33, %v1191_v49  ;;  %v1213_v33 = vrot.slane %v2603_v62, %v2423_v56 }
 0x620   :  { %v1193_v50 = vmul.f32 %v1192_v43, %v1192_v43 }
 0x622   :  { %v1194_v46 = vsel %vm1065_vm7, %v1193_v50, 0.0 }
 0x623   :  { %v1195_v52 = vrot.slane %v1194_v46, 4 }
 0x625   :  { %v1196_v53 = vadd.f32 %v1195_v52, %v1194_v46 }
 0x627   :  { %v1197_v54 = vrot.slane %v1196_v53, 2 }
 0x629   :  { %v1198_v57 = vadd.f32 %v1197_v54, %v1196_v53 }
 0x62b   :  { %v1199_v59 = vrot.slane %v1198_v57, 1 }
 0x62d   :  { %v1200_v60 = vadd.f32 %v1199_v59, %v1198_v57 }
 0x62f   :  { %v1201_v61 = vmul.f32 0.125, %v1200_v60 }
 0x631   :  { %v1202_v63 = vadd.f32 1e-05, %v1201_v61 }
 0x633   :  { %1851 = vrsqrt.f32 %v1202_v63 }
 0x640   :  { %v1852_v32 = vpop.eup %1851 }
 0x641   :  { %v1204_v35 = vmul.f32 %v1852_v32, %v1192_v43 }
 0x643   :  { %v1209_v36 = vmul.f32 %v1208_v30, %v1204_v35 }
 0x645   :  { %v1214_v37 = vadd.f32 %v1213_v33, %v1209_v36 }
 0x647   :  { %1829 = vmatmul.mubr.msk.f32.vlgmr.msra.gmra.mxu1 %vm1065_vm7, %v1214_v37 }
 0x707   :  { %v1294_v42 = vpop.f32.mrf.mxu1 }
 0x708   :  { %v1295_v34 = vadd.f32 %v1294_v42, %v1224_v47  ;;  %v1323_v42 = vrot.slane %v2603_v62, %v662_v41 }
 0x709   :  { %v1830_v48 = vpop.f32.mrf.mxu1 }
 0x70a   :  { %v1298_v49 = vmax.f32 %v1295_v34, 0.0 }
 0x70c   :  { %v1299_v50 = vsel %vm1065_vm7, %v1298_v49, 0.0 }
 0x70d   :  { %v1300_v46 = vrot.slane %v1299_v50, 4 }
 0x70f   :  { %v1301_v52 = vadd.f32 %v1300_v46, %v1299_v50 }
 0x711   :  { %v1302_v43 = vrot.slane %v1301_v52, 2 }
 0x713   :  { %v1303_v53 = vadd.f32 %v1302_v43, %v1301_v52 }
 0x715   :  { %v1304_v54 = vrot.slane %v1303_v53, 1 }
 0x717   :  { %v1305_v57 = vadd.f32 %v1304_v54, %v1303_v53 }
 0x719   :  { %v1306_v59 = vmul.f32 0.125, %v1305_v57 }
 0x71b   :  { %v1307_v60 = vsub.f32 %v1298_v49, %v1306_v59 }
 0x71d   :  { %v1308_v61 = vmul.f32 %v1307_v60, %v1307_v60 }
 0x71f   :  { %v1309_v63 = vsel %vm1065_vm7, %v1308_v61, 0.0 }
 0x720   :  { %v1310_v30 = vrot.slane %v1309_v63, 4 }
 0x722   :  { %v1311_v32 = vadd.f32 %v1310_v30, %v1309_v63 }
 0x724   :  { %v1312_v38 = vrot.slane %v1311_v32, 2 }
 0x726   :  { %v1313_v35 = vadd.f32 %v1312_v38, %v1311_v32 }
 0x728   :  { %v1314_v33 = vrot.slane %v1313_v35, 1 }
 0x72a   :  { %v1315_v36 = vadd.f32 %v1314_v33, %v1313_v35 }
 0x72c   :  { %v1316_v37 = vmul.f32 0.125, %v1315_v36 }
 0x72e   :  { %v1317_v47 = vadd.f32 1e-05, %v1316_v37 }
 0x730   :  { %1853 = vrsqrt.f32 %v1317_v47 }
 0x73d   :  { %v1854_v34 = vpop.eup %1853 }
 0x73e   :  { %v1319_v48 = vmul.f32 %v1854_v34, %v1307_v60 }
 0x740   :  { %v1324_v50 = vmul.f32 %v1323_v42, %v1319_v48 }
 0x742   :  { %v1329_v49 = vadd.f32 %v2555_v51, %v1324_v50 }
 0x743   :  { %1941 = dma.done.wait [#allocation4 + $0x1], 3840 }
 0x744   :  { %1942 = vsyncadd [#allocation4 + $0x1], 4294963456  ;;  %1422 = vmatpush1.msra.mxu0 %v2171_v24  ;;  %1463 = vmatprep.mubr.f32.mxu0 %v1949_v31 }
 0x745   :  { %1423 = vmatprep.subr.mxu0 %v2146_v19  ;;  %1493 = vmatpush1.msra.mxu1 %v2181_v26 }
 0x746   :  { %1424 = vmatpush1.msra.mxu0 %v2141_v18  ;;  %1494 = vmatprep.subr.mxu1 %v2156_v21 }
 0x747   :  { %1425 = vmatprep.subr.mxu0 %v2116_v13  ;;  %1495 = vmatpush1.msra.mxu1 %v2151_v20 }
 0x748   :  { %1426 = vmatpush1.msra.mxu0 %v2111_v12  ;;  %1496 = vmatprep.subr.mxu1 %v2126_v15 }
 0x749   :  { %1427 = vmatprep.subr.mxu0 %v2086_v7  ;;  %1497 = vmatpush1.msra.mxu1 %v2121_v14 }
 0x74a   :  { %1428 = vmatpush1.msra.mxu0 %v2081_v6  ;;  %1498 = vmatprep.subr.mxu1 %v2096_v9 }
 0x74b   :  { %1429 = vmatprep.subr.mxu0 %v2056_v1  ;;  %1499 = vmatpush1.msra.mxu1 %v2091_v8 }
 0x74c   :  { %1430 = vmatpush1.msra.mxu0 %v2051_v0  ;;  %1500 = vmatprep.subr.mxu1 %v2066_v3  ;;  %v1364_v0 = vld [vmem:[#allocation9] sm:$0x3f] }
 0x74d   :  { %1681 = vmatmul.mubr.msk.f32.vlgmr.msra.gmra.mxu0 %vm1065_vm7, %v1329_v49  ;;  %1563 = vmatprep.subr.mxu0 %v2196_v29  ;;  %v1369_v1 = vrot.slane %v1364_v0, %v2356_v45  ;;  %v1377_v6 = vrot.slane %v1364_v0, %v2371_v40  ;;  %v1381_v9 = vrot.slane %v1364_v0, %v2413_v58 }
 0x74e   :  { %1564 = vmatpush1.msra.mxu0 %v2191_v28  ;;  %1501 = vmatpush1.msra.mxu1 %v2061_v2  ;;  %v1373_v2 = vrot.slane %v1364_v0, %v2368_v39  ;;  %v1385_v13 = vrot.slane %v1364_v0, %v2420_v55  ;;  %v1389_v14 = vrot.slane %v1364_v0, %v2423_v56 }
 0x74f   :  { %1565 = vmatprep.subr.mxu0 %v2166_v23  ;;  %1534 = vmatprep.mubr.f32.mxu1 %v1949_v31 }
 0x750   :  { %1566 = vmatpush1.msra.mxu0 %v2161_v22  ;;  %1682 = vmatmul.mubr.msk.f32.vlgmr.msra.gmra.mxu1 %vm1065_vm7, %v1329_v49 }
 0x751   :  { %1567 = vmatprep.subr.mxu0 %v2136_v17  ;;  %1605 = vmatprep.mubr.f32.mxu0 %v1949_v31 }
 0x752   :  { %1568 = vmatpush1.msra.mxu0 %v2131_v16 }
 0x753   :  { %1569 = vmatprep.subr.mxu0 %v2106_v11 }
 0x754   :  { %1570 = vmatpush1.msra.mxu0 %v2101_v10 }
 0x755   :  { %1571 = vmatprep.subr.mxu0 %v2076_v5 }
 0x756   :  { %1572 = vmatpush1.msra.mxu0 %v2071_v4 }
 0x757   :  { %1683 = vmatmul.mubr.msk.f32.vlgmr.msra.gmra.mxu0 %vm1065_vm7, %v1329_v49 }
 0x80d   :  { %v1465_v3 = vpop.f32.mrf.mxu0 }
 0x80e   :  { %v1466_v7 = vadd.f32 %v1465_v3, %v1369_v1 }
 0x80f   :  { %v1467_v8 = vpop.f32.mrf.mxu0 }
 0x810   :  { %1612 = vst [vmem:[%s2722_s16] sm:$0xff] %v1466_v7  ;;  %v1468_v5 = vadd.f32 %v1467_v8, %v1373_v2  ;;  %v1536_v4 = vpop.f32.mrf.mxu1 }
 0x811   :  { %v1537_v10 = vadd.f32 %v1536_v4, %v1377_v6 }
 0x812   :  { %1613 = vst [vmem:[%s2722_s16 + $0x8] sm:$0xff] %v1468_v5  ;;  %v1538_v11 = vpop.f32.mrf.mxu1 }
 0x813   :  { %1614 = vst [vmem:[%s2722_s16 + $0x10] sm:$0xff] %v1537_v10  ;;  %v1539_v12 = vadd.f32 %v1538_v11, %v1381_v9 }
 0x815   :  { %1615 = vst [vmem:[%s2722_s16 + $0x18] sm:$0xff] %v1539_v12 }
 0x817   :  { %v1607_v15 = vpop.f32.mrf.mxu0 }
 0x818   :  { %v1608_v16 = vadd.f32 %v1607_v15, %v1385_v13 }
 0x819   :  { %v1609_v17 = vpop.f32.mrf.mxu0 }
 0x81a   :  { %1616 = vst [vmem:[%s2722_s16 + $0x20] sm:$0xff] %v1608_v16  ;;  %v1610_v18 = vadd.f32 %v1609_v17, %v1389_v14 }
 0x81c   :  { %1617 = vst [vmem:[%s2722_s16 + $0x28] sm:$0xff] %v1610_v18 }
 0x81d   :  { %1626 = vsyncpa [#allocation6], 1 }
 0x81e   :  { %1627 = vsyncpa [#allocation8], 1 }
 0x81f   :  { %1628 = vsyncmov [#allocation4] }
 0x822   :  { %s1629_s19 = vpop.sfrf %1628 }
 0x823   :  { %p1684_p6 = scmp.ne.s32.totalorder %s1629_s19, 0 }
 0x825   :  { %1633 = shalt.err (%p1684_p6)  }
 0x826   :  { %1635 = vsyncmov [#allocation4 + $0x1] }
 0x829   :  { %s1636_s20 = vpop.sfrf %1635 }
 0x82a   :  { %p1685_p7 = scmp.ne.s32.totalorder %s1636_s20, 0 }
 0x82c   :  { %1640 = shalt.err (%p1685_p7)  }

</bundles_post_ra>
